<compile_context>
chip_gen: v6e
topology: v6e:2x2x1
jax: 0.10.0
libtpu: 0.0.40
codegen_flags: <defaults>
</compile_context>

<pallas_src>
import functools
import math

import jax
import jax.numpy as jnp
from jax import lax
from jax.experimental import pallas as pl
from jax.experimental.pallas import tpu as pltpu


# ---------------------------------------------------------------------------
# Capability / hardware probes
# ---------------------------------------------------------------------------
def _probe_kernel(x_ref, o_ref):
    o_ref[...] = x_ref[...] + 1.0


@functools.lru_cache(maxsize=None)
def _single_buffer_ok() -> bool:
    """True iff BlockSpec(pipeline_mode=pl.Buffered(1)) lowers on this backend."""
    try:
        fn = pl.pallas_call(
            _probe_kernel,
            out_shape=jax.ShapeDtypeStruct((8, 128), jnp.float32),
            grid=(2,),
            in_specs=[pl.BlockSpec((8, 128), lambda i: (0, 0),
                                   pipeline_mode=pl.Buffered(1))],
            out_specs=pl.BlockSpec((8, 128), lambda i: (0, 0)),
        )
        jax.block_until_ready(fn(jnp.zeros((8, 128), jnp.float32)))
        return True
    except Exception:
        return False


def _vmem_capacity_bytes() -> int:
    try:
        return int(pltpu.get_tpu_info().vmem_capacity_bytes)
    except Exception:
        return 64 * 1024 * 1024          # conservative (v7x per-core) fallback


def _spec(block_shape, index_map, *, single_buffer=False):
    """BlockSpec; grid-invariant blocks are single-buffered when supported."""
    if single_buffer and _single_buffer_ok():
        return pl.BlockSpec(block_shape, index_map, pipeline_mode=pl.Buffered(1))
    return pl.BlockSpec(block_shape, index_map)


def _pick_tile(total, target, align):
    """Largest divisor of `total` <= target that is a multiple of `align`
    (falls back to the full extent, e.g. for tiny test shapes)."""
    if total <= target:
        return total
    t = (target // align) * align
    while t >= align:
        if total % t == 0:
            return t
        t -= align
    return total


# ---------------------------------------------------------------------------
# Fused layernorm (two-pass variance), torch LayerNorm semantics, eps = 1e-5
# ---------------------------------------------------------------------------
def _layer_norm(v, gamma, beta):
    mu = jnp.mean(v, axis=-1, keepdims=True)
    d = v - mu
    var = jnp.mean(d * d, axis=-1, keepdims=True)
    return d * lax.rsqrt(var + 1e-5) * gamma + beta


# ---------------------------------------------------------------------------
# Pallas kernel
#   grid = (batch, query_tiles, ff_chunks)
#   * batch is "parallel"; query tiles and the 4H feed-forward chunks are
#     "arbitrary" (K/V scratch carried across qi, FF accumulator across fk).
#   * K/V projections fill a per-batch VMEM scratch at (qi==0, fk==0).
#   * attention + residual + LN1 run at fk==0 and write y1 to VMEM scratch;
#     the FF output accumulates across fk; LN2 + store happen at the last fk.
# ---------------------------------------------------------------------------
def _liquid_layer_kernel(*args, num_heads, head_dim, has_mask, hoist_kv):
    if has_mask:
        mask_ref, *args = args
    else:
        mask_ref = None
    (xf_ref, xq_ref,                       # (S, H) full seq / (TQ, H) query tile
     wq_ref, bq_ref,                       # (nh, H, hd), (nh, 1, hd)
     wk_ref, bk_ref,
     wv_ref, bv_ref,
     wp_ref, bp_ref,                       # (nh, hd, H), (1, H)
     g1_ref, beta1_ref,                    # (1, H)
     w1_ref, b1_ref,                       # (H, TFF), (1, TFF)   ff chunk
     w2_ref, b2_ref,                       # (TFF, H), (1, H)
     g2_ref, beta2_ref,                    # (1, H)
     out_ref,                              # (TQ, H)
     k_sc, v_sc,                           # (nh, S, hd) compute dtype
     y1_sc, acc_sc) = args                 # (TQ, H) f32 each

    qi = pl.program_id(1)
    fk = pl.program_id(2)
    n_fk = pl.num_programs(2)
    cdt = wq_ref.dtype                     # MXU operand dtype (bf16 by default)
    tq, hsz = xq_ref.shape
    inv_sqrt_d = 1.0 / math.sqrt(head_dim)

    # ---- K/V projection: once per batch (hoisted) or once per query tile ----
    if hoist_kv:
        fill_cond = jnp.logical_and(qi == 0, fk == 0)
    else:
        fill_cond = fk == 0

    @pl.when(fill_cond)
    def _fill_kv():
        xf = xf_ref[...]                   # (S, H) compute dtype

        @pl.loop(0, num_heads)
        def _(h):
            k_h = (jnp.dot(xf, wk_ref[h], preferred_element_type=jnp.float32)
                   + bk_ref[h])                                   # (S, hd) f32
            v_h = (jnp.dot(xf, wv_ref[h], preferred_element_type=jnp.float32)
                   + bv_ref[h])
            k_sc[h] = k_h.astype(k_sc.dtype)
            v_sc[h] = v_h.astype(v_sc.dtype)

    # ---- attention + residual + LN1 (only on the first ff chunk) -----------
    @pl.when(fk == 0)
    def _attention():
        xq = xq_ref[...]                   # (TQ, H) compute dtype
        if has_mask:
            # additive bias computed once: 0 for keep, -1e9 for masked keys
            bias = (mask_ref[...].astype(jnp.float32) - 1.0) * 1e9   # (1, S)

        def head_body(h, attn):
            q_h = (jnp.dot(xq, wq_ref[h], preferred_element_type=jnp.float32)
                   + bq_ref[h]) * inv_sqrt_d                      # (TQ, hd) f32
            # transpose-free scores: contract last dims of q and k
            s = lax.dot_general(q_h.astype(cdt), k_sc[h],
                                dimension_numbers=(((1,), (1,)), ((), ())),
                                preferred_element_type=jnp.float32)  # (TQ, S)
            if has_mask:
                s = s + bias
            s = s - jnp.max(s, axis=-1, keepdims=True)
            e = jnp.exp(s)                                        # f32
            p = e * pl.reciprocal(jnp.sum(e, axis=-1, keepdims=True),
                                  approx=True)
            ctx = jnp.dot(p.astype(cdt), v_sc[h],
                          preferred_element_type=jnp.float32)      # (TQ, hd)
            # fold output projection into the head loop -> lane-dense (TQ, H)
            return attn + jnp.dot(ctx.astype(cdt), wp_ref[h],
                                  preferred_element_type=jnp.float32)

        attn = lax.fori_loop(0, num_heads, head_body,
                             jnp.zeros((tq, hsz), jnp.float32),
                             unroll=num_heads <= 4)
        attn = attn + bp_ref[...]

        y1_sc[...] = _layer_norm(xq.astype(jnp.float32) + attn,
                                 g1_ref[...], beta1_ref[...])
        acc_sc[...] = jnp.zeros_like(acc_sc)

    # ---- feed-forward: stream one chunk of the 4H dimension ----------------
    h1 = jnp.dot(y1_sc[...].astype(cdt), w1_ref[...],
                 preferred_element_type=jnp.float32) + b1_ref[...]   # (TQ, TFF)
    h1 = h1 * jax.nn.sigmoid(h1)                                     # SiLU (f32)
    acc_sc[...] += jnp.dot(h1.astype(cdt), w2_ref[...],
                           preferred_element_type=jnp.float32)       # (TQ, H)

    # ---- residual + LN2 + store (only on the last ff chunk) ----------------
    @pl.when(fk == n_fk - 1)
    def _finalize():
        ff = acc_sc[...] + b2_ref[...]
        out = _layer_norm(y1_sc[...] + ff, g2_ref[...], beta2_ref[...])
        out_ref[...] = out.astype(out_ref.dtype)


# ---------------------------------------------------------------------------
# Wrapper
# ---------------------------------------------------------------------------
def liquid_layer_forward(x, params, mask=None, *, num_heads,
                         q_tile=None, ff_tile=None,
                         compute_dtype=jnp.bfloat16):
    """x: (B, S, H); mask: optional (B, S) with 1 = keep / 0 = masked."""
    B, S, H = x.shape
    hd = H // num_heads
    assert hd * num_heads == H
    F = 4 * H

    # ---- generation-aware defaults ------------------------------------------
    vmem_cap = _vmem_capacity_bytes()
    big_vmem = vmem_cap >= 96 * 1024 * 1024      # v5e/v6e: 128 MiB; v7x: 64 MiB
    if q_tile is None:
        q_tile = 512 if big_vmem else 256
    if ff_tile is None:
        ff_tile = 1024 if big_vmem else 512
    vmem_limit = max(32 * 1024 * 1024,
                     min(vmem_cap * 3 // 4, 100 * 1024 * 1024))

    TQ = _pick_tile(S, q_tile, 8)                # sublane-aligned query tile
    TFF = _pick_tile(F, ff_tile, 128)            # lane-aligned ff chunk
    n_q = S // TQ
    grid = (B, n_q, F // TFF)

    # Hoist K/V across query tiles (compute once per batch) unless that would
    # leave a v7x TensorCore idle (B == 1 with several query tiles).
    hoist_kv = (B >= 2) or (n_q == 1)
    qi_sem = "arbitrary" if hoist_kv else "parallel"

    # ---- head-major weight layouts + MXU-operand dtype (done once, free) ----
    def head_major_w(w):                         # (H, H) -> (nh, H, hd)
        return w.reshape(H, num_heads, hd).transpose(1, 0, 2).astype(compute_dtype)

    def head_major_b(b):                         # (1, H) -> (nh, 1, hd), f32
        return b.reshape(num_heads, 1, hd)

    wq3 = head_major_w(params["wq"]); bq3 = head_major_b(params["bq"])
    wk3 = head_major_w(params["wk"]); bk3 = head_major_b(params["bk"])
    wv3 = head_major_w(params["wv"]); bv3 = head_major_b(params["bv"])
    wp3 = params["wp"].reshape(num_heads, hd, H).astype(compute_dtype)
    w1 = params["w1"].astype(compute_dtype)
    w2 = params["w2"].astype(compute_dtype)
    x_c = x.astype(compute_dtype)

    has_mask = mask is not None

    def rep(arr):                                # grid-invariant, single-buffered
        nd = arr.ndim
        return _spec(arr.shape, lambda *_: (0,) * nd, single_buffer=True)

    operands, in_specs = [], []
    if has_mask:
        operands.append(mask.reshape(B, 1, S).astype(jnp.float32))
        in_specs.append(_spec((None, 1, S), lambda b, qi, fk: (b, 0, 0),
                              single_buffer=True))

    operands += [
        x_c, x_c,
        wq3, bq3, wk3, bk3, wv3, bv3, wp3, params["bp"],
        params["g1"], params["beta1"],
        w1, params["b1"], w2, params["b2"],
        params["g2"], params["beta2"],
    ]
    in_specs += [
        # full-sequence x for K/V (changes only with batch -> single buffer)
        _spec((None, S, H), lambda b, qi, fk: (b, 0, 0), single_buffer=True),
        # query tile of x (changes every qi step -> default double buffer)
        _spec((None, TQ, H), lambda b, qi, fk: (b, qi, 0)),
        rep(wq3), rep(bq3), rep(wk3), rep(bk3), rep(wv3), rep(bv3),
        rep(wp3), rep(params["bp"]),
        rep(params["g1"]), rep(params["beta1"]),
        # streamed FF chunks (double buffered; bump to pl.Buffered(3) on v5e if
        # profiling shows exposed w1/w2 DMA)
        _spec((H, TFF), lambda b, qi, fk: (0, fk)),
        _spec((1, TFF), lambda b, qi, fk: (0, fk)),
        _spec((TFF, H), lambda b, qi, fk: (fk, 0)),
        rep(params["b2"]),
        rep(params["g2"]), rep(params["beta2"]),
    ]

    kernel = functools.partial(_liquid_layer_kernel, num_heads=num_heads,
                               head_dim=hd, has_mask=has_mask,
                               hoist_kv=hoist_kv)

    return pl.pallas_call(
        kernel,
        out_shape=jax.ShapeDtypeStruct((B, S, H), x.dtype),
        grid_spec=pltpu.PrefetchScalarGridSpec(
            num_scalar_prefetch=0,
            grid=grid,
            in_specs=in_specs,
            out_specs=pl.BlockSpec((None, TQ, H), lambda b, qi, fk: (b, qi, 0)),
            scratch_shapes=[
                pltpu.VMEM((num_heads, S, hd), compute_dtype),   # K cache
                pltpu.VMEM((num_heads, S, hd), compute_dtype),   # V cache
                pltpu.VMEM((TQ, H), jnp.float32),                # y1 (post-LN1)
                pltpu.VMEM((TQ, H), jnp.float32),                # FF accumulator
            ],
        ),
        compiler_params=pltpu.CompilerParams(
            dimension_semantics=("parallel", qi_sem, "arbitrary"),
            vmem_limit_bytes=int(vmem_limit),
        ),
    )(*operands)


# ---------------------------------------------------------------------------
# Pure-JAX reference (mirrors the PyTorch forward, dropout = identity)
# ---------------------------------------------------------------------------
def liquid_layer_reference(x, params, mask=None, *, num_heads):
    B, S, H = x.shape
    hd = H // num_heads

    q = x @ params["wq"] + params["bq"]
    k = x @ params["wk"] + params["bk"]
    v = x @ params["wv"] + params["bv"]
    q = q.reshape(B, S, num_heads, hd).transpose(0, 2, 1, 3)
    k = k.reshape(B, S, num_heads, hd).transpose(0, 2, 1, 3)
    v = v.reshape(B, S, num_heads, hd).transpose(0, 2, 1, 3)
    scores = jnp.einsum("bhqd,bhkd->bhqk", q, k) / math.sqrt(hd)
    if mask is not None:
        m = mask[:, None, None, :]
        scores = jnp.where(m == 0, -1e9, scores)
    attn = jax.nn.softmax(scores, axis=-1)
    ctx = jnp.einsum("bhqk,bhkd->bhqd", attn, v)
    ctx = ctx.transpose(0, 2, 1, 3).reshape(B, S, H)
    attn_out = ctx @ params["wp"] + params["bp"]

    def ln(val, g, b):
        mu = jnp.mean(val, axis=-1, keepdims=True)
        var = jnp.mean((val - mu) ** 2, axis=-1, keepdims=True)
        return (val - mu) / jnp.sqrt(var + 1e-5) * g + b

    y1 = ln(x + attn_out, params["g1"], params["beta1"])
    h1 = y1 @ params["w1"] + params["b1"]
    h1 = h1 * jax.nn.sigmoid(h1)
    ff = h1 @ params["w2"] + params["b2"]
    return ln(y1 + ff, params["g2"], params["beta2"])


# ---------------------------------------------------------------------------
# Deterministic parameter init (shapes implied by LiquidLayer.__init__)
# ---------------------------------------------------------------------------
def init_params(key, hidden_size):
    H = hidden_size
    ks = jax.random.split(key, 12)

    def lin(kw, kb, fan_in, fan_out):
        bound = 1.0 / math.sqrt(fan_in)
        w = jax.random.uniform(kw, (fan_in, fan_out), jnp.float32, -bound, bound)
        b = jax.random.uniform(kb, (1, fan_out), jnp.float32, -bound, bound)
        return w, b

    wq, bq = lin(ks[0], ks[1], H, H)
    wk, bk = lin(ks[2], ks[3], H, H)
    wv, bv = lin(ks[4], ks[5], H, H)
    wp, bp = lin(ks[6], ks[7], H, H)
    w1, b1 = lin(ks[8], ks[9], H, 4 * H)
    w2, b2 = lin(ks[10], ks[11], 4 * H, H)
    return dict(
        wq=wq, bq=bq, wk=wk, bk=bk, wv=wv, bv=bv, wp=wp, bp=bp,
        g1=jnp.ones((1, H), jnp.float32), beta1=jnp.zeros((1, H), jnp.float32),
        w1=w1, b1=b1, w2=w2, b2=b2,
        g2=jnp.ones((1, H), jnp.float32), beta2=jnp.zeros((1, H), jnp.float32),
    )


if __name__ == "__main__":
    # TODO(synk): dropout is identity (eval mode); training parity would need
    # pltpu.prng_* based masks.
    B, S, H, HEADS = 2, 8, 32, 4

    key = jax.random.PRNGKey(0)
    kx, kp = jax.random.split(key)
    x = jax.random.normal(kx, (B, S, H), jnp.float32)
    params = init_params(kp, H)
    mask = jnp.ones((B, S), jnp.float32).at[1, -2:].set(0.0)

    ref = liquid_layer_reference(x, params, mask=None, num_heads=HEADS)
    ref_m = liquid_layer_reference(x, params, mask=mask, num_heads=HEADS)

    # f32 MXU-operand path (tight tolerance)
    out_f32 = jax.block_until_ready(
        liquid_layer_forward(x, params, mask=None, num_heads=HEADS,
                             compute_dtype=jnp.float32))
    assert out_f32.shape == (B, S, H)
    assert jnp.max(jnp.abs(out_f32 - ref)) < 2e-3, "Pallas f32 mismatch vs reference"

    # default bf16 MXU-operand path (f32 accumulation), no mask
    out_bf16 = jax.block_until_ready(
        liquid_layer_forward(x, params, mask=None, num_heads=HEADS))
    assert jnp.max(jnp.abs(out_bf16 - ref)) < 5e-2, "Pallas bf16 mismatch vs reference"

    # default bf16 path, masked (additive-bias path)
    out_bf16_m = jax.block_until_ready(
        liquid_layer_forward(x, params, mask=mask, num_heads=HEADS))
    assert jnp.max(jnp.abs(out_bf16_m - ref_m)) < 5e-2, "Pallas bf16 masked mismatch"

    print("KERNEL_OK")
</pallas_src>

<mosaic_0001>
module attributes {stable_mosaic.version = 11 : i64} {
  func.func @_probe_kernel(%arg0: i32, %arg1: memref<8x128xf32, #tpu.memory_space<vmem>>, %arg2: memref<8x128xf32, #tpu.memory_space<vmem>>) attributes {dimension_semantics = [#tpu.dimension_semantics<arbitrary>], iteration_bounds = array<i64: 2>, scalar_prefetch = 0 : i64, scratch_operands = 0 : i64, tpu.core_type = #tpu.core_type<tc>, window_params = [{pipeline_mode = #tpu.pipeline_mode<synchronous>, transform_indices = @transform_0, window_bounds = array<i64: 8, 128>}, {pipeline_mode = #tpu.pipeline_mode<synchronous>, transform_indices = @transform_1, window_bounds = array<i64: 8, 128>}]} {
    %c0 = arith.constant 0 : index
    %c0_0 = arith.constant 0 : index
    %0 = vector.load %arg1[%c0, %c0_0] : memref<8x128xf32, #tpu.memory_space<vmem>>, vector<8x128xf32>
    %cst = arith.constant 1.000000e+00 : f32
    %1 = vector.broadcast %cst : f32 to vector<8x128xf32>
    %2 = arith.addf %0, %1 : vector<8x128xf32>
    %c0_1 = arith.constant 0 : index
    %c0_2 = arith.constant 0 : index
    %3 = vector.load %arg2[%c0_1, %c0_2] : memref<8x128xf32, #tpu.memory_space<vmem>>, vector<8x128xf32>
    tpu.vector_store %arg2[%c0_1, %c0_2], %2 {strides = array<i32>} : memref<8x128xf32, #tpu.memory_space<vmem>>, vector<8x128xf32>,
    return
  }
  func.func @transform_0(%arg0: i32) -> (i32, i32) {
    %c0_i32 = arith.constant 0 : i32
    %c0_i32_0 = arith.constant 0 : i32
    %c0_i32_1 = arith.constant 0 : i32
    return %c0_i32, %c0_i32_0 : i32, i32
  }
  func.func @transform_1(%arg0: i32) -> (i32, i32) {
    %c0_i32 = arith.constant 0 : i32
    %c0_i32_0 = arith.constant 0 : i32
    %c0_i32_1 = arith.constant 0 : i32
    return %c0_i32, %c0_i32_0 : i32, i32
  }
}

module attributes {stable_mosaic.version = 11 : i64} {
  func.func @_liquid_layer_kernel(%arg0: i32, %arg1: i32, %arg2: i32, %arg3: memref<1x8x32xf32, #tpu.memory_space<vmem>>, %arg4: memref<1x8x32xf32, #tpu.memory_space<vmem>>, %arg5: memref<4x32x8xf32, #tpu.memory_space<vmem>>, %arg6: memref<4x1x8xf32, #tpu.memory_space<vmem>>, %arg7: memref<4x32x8xf32, #tpu.memory_space<vmem>>, %arg8: memref<4x1x8xf32, #tpu.memory_space<vmem>>, %arg9: memref<4x32x8xf32, #tpu.memory_space<vmem>>, %arg10: memref<4x1x8xf32, #tpu.memory_space<vmem>>, %arg11: memref<4x8x32xf32, #tpu.memory_space<vmem>>, %arg12: memref<1x32xf32, #tpu.memory_space<vmem>>, %arg13: memref<1x32xf32, #tpu.memory_space<vmem>>, %arg14: memref<1x32xf32, #tpu.memory_space<vmem>>, %arg15: memref<32x128xf32, #tpu.memory_space<vmem>>, %arg16: memref<1x128xf32, #tpu.memory_space<vmem>>, %arg17: memref<128x32xf32, #tpu.memory_space<vmem>>, %arg18: memref<1x32xf32, #tpu.memory_space<vmem>>, %arg19: memref<1x32xf32, #tpu.memory_space<vmem>>, %arg20: memref<1x32xf32, #tpu.memory_space<vmem>>, %arg21: memref<1x8x32xf32, #tpu.memory_space<vmem>>, %arg22: memref<4x8x8xf32, #tpu.memory_space<vmem>>, %arg23: memref<4x8x8xf32, #tpu.memory_space<vmem>>, %arg24: memref<8x32xf32, #tpu.memory_space<vmem>>, %arg25: memref<8x32xf32, #tpu.memory_space<vmem>>) attributes {dimension_semantics = [#tpu.dimension_semantics<parallel>, #tpu.dimension_semantics<arbitrary>, #tpu.dimension_semantics<arbitrary>], iteration_bounds = array<i64: 2, 1, 1>, scalar_prefetch = 0 : i64, scratch_operands = 4 : i64, tpu.core_type = #tpu.core_type<tc>, window_params = [{transform_indices = @transform_0, window_bounds = array<i64: 1, 8, 32>}, {transform_indices = @transform_1, window_bounds = array<i64: 1, 8, 32>}, {pipeline_mode = #tpu.pipeline_mode<synchronous>, transform_indices = @transform_2, window_bounds = array<i64: 4, 32, 8>}, {pipeline_mode = #tpu.pipeline_mode<synchronous>, transform_indices = @transform_3, window_bounds = array<i64: 4, 1, 8>}, {pipeline_mode = #tpu.pipeline_mode<synchronous>, transform_indices = @transform_4, window_bounds = array<i64: 4, 32, 8>}, {pipeline_mode = #tpu.pipeline_mode<synchronous>, transform_indices = @transform_5, window_bounds = array<i64: 4, 1, 8>}, {pipeline_mode = #tpu.pipeline_mode<synchronous>, transform_indices = @transform_6, window_bounds = array<i64: 4, 32, 8>}, {pipeline_mode = #tpu.pipeline_mode<synchronous>, transform_indices = @transform_7, window_bounds = array<i64: 4, 1, 8>}, {pipeline_mode = #tpu.pipeline_mode<synchronous>, transform_indices = @transform_8, window_bounds = array<i64: 4, 8, 32>}, {pipeline_mode = #tpu.pipeline_mode<synchronous>, transform_indices = @transform_9, window_bounds = array<i64: 1, 32>}, {pipeline_mode = #tpu.pipeline_mode<synchronous>, transform_indices = @transform_10, window_bounds = array<i64: 1, 32>}, {pipeline_mode = #tpu.pipeline_mode<synchronous>, transform_indices = @transform_11, window_bounds = array<i64: 1, 32>}, {transform_indices = @transform_12, window_bounds = array<i64: 32, 128>}, {transform_indices = @transform_13, window_bounds = array<i64: 1, 128>}, {transform_indices = @transform_14, window_bounds = array<i64: 128, 32>}, {pipeline_mode = #tpu.pipeline_mode<synchronous>, transform_indices = @transform_15, window_bounds = array<i64: 1, 32>}, {pipeline_mode = #tpu.pipeline_mode<synchronous>, transform_indices = @transform_16, window_bounds = array<i64: 1, 32>}, {pipeline_mode = #tpu.pipeline_mode<synchronous>, transform_indices = @transform_17, window_bounds = array<i64: 1, 32>}, {transform_indices = @transform_18, window_bounds = array<i64: 1, 8, 32>}]} {
    %c0_i32 = arith.constant 0 : i32
    %0 = arith.cmpi eq, %arg1, %c0_i32 : i32
    %c0_i32_0 = arith.constant 0 : i32
    %1 = arith.cmpi eq, %arg2, %c0_i32_0 : i32
    %2 = arith.andi %0, %1 : i1
    %3 = arith.extui %2 : i1 to i32
    %c0_i32_1 = arith.constant 0 : i32
    %4 = arith.cmpi ne, %3, %c0_i32_1 : i32
    scf.if %4 {
      %c0_19 = arith.constant 0 : index
      %c0_20 = arith.constant 0 : index
      %c0_21 = arith.constant 0 : index
      %28 = vector.load %arg3[%c0_19, %c0_20, %c0_21] : memref<1x8x32xf32, #tpu.memory_space<vmem>>, vector<1x8x32xf32>
      %29 = vector.shape_cast %28 : vector<1x8x32xf32> to vector<8x32xf32>
      %c0_i32_22 = arith.constant 0 : i32
      %c4_i32 = arith.constant 4 : i32
      %30 = arith.addi %c0_i32_22, %c4_i32 : i32
      %c1_i32 = arith.constant 1 : i32
      scf.for %arg26 = %c0_i32_22 to %30 step %c1_i32  : i32 {
        %c1_i32_24 = arith.constant 1 : i32
        %31 = arith.muli %arg26, %c1_i32_24 : i32
        %c0_i32_25 = arith.constant 0 : i32
        %32 = arith.addi %c0_i32_25, %31 : i32
        %33 = arith.index_cast %32 : i32 to index
        %c0_26 = arith.constant 0 : index
        %c0_27 = arith.constant 0 : index
        %34 = vector.load %arg7[%33, %c0_26, %c0_27] : memref<4x32x8xf32, #tpu.memory_space<vmem>>, vector<1x32x8xf32>
        %35 = vector.shape_cast %34 : vector<1x32x8xf32> to vector<32x8xf32>
        %cst_28 = arith.constant dense<0.000000e+00> : vector<8x8xf32>
        %36 = tpu.matmul %29, %35, %cst_28 {dimension_numbers = #tpu.dot_dimension_numbers<[1], [0], [0], [1], [0, 0, 1, 1], [], []>} : vector<8x32xf32>, vector<32x8xf32>, vector<8x8xf32> -> vector<8x8xf32>
        %37 = arith.index_cast %32 : i32 to index
        %c0_29 = arith.constant 0 : index
        %c0_30 = arith.constant 0 : index
        %38 = vector.load %arg8[%37, %c0_29, %c0_30] : memref<4x1x8xf32, #tpu.memory_space<vmem>>, vector<1x1x8xf32>
        %39 = vector.shape_cast %38 : vector<1x1x8xf32> to vector<1x8xf32>
        %40 = vector.broadcast %39 : vector<1x8xf32> to vector<8x8xf32>
        %41 = arith.addf %36, %40 : vector<8x8xf32>
        %42 = arith.index_cast %32 : i32 to index
        %c0_31 = arith.constant 0 : index
        %c0_32 = arith.constant 0 : index
        %43 = vector.load %arg9[%42, %c0_31, %c0_32] : memref<4x32x8xf32, #tpu.memory_space<vmem>>, vector<1x32x8xf32>
        %44 = vector.shape_cast %43 : vector<1x32x8xf32> to vector<32x8xf32>
        %cst_33 = arith.constant dense<0.000000e+00> : vector<8x8xf32>
        %45 = tpu.matmul %29, %44, %cst_33 {dimension_numbers = #tpu.dot_dimension_numbers<[1], [0], [0], [1], [0, 0, 1, 1], [], []>} : vector<8x32xf32>, vector<32x8xf32>, vector<8x8xf32> -> vector<8x8xf32>
        %46 = arith.index_cast %32 : i32 to index
        %c0_34 = arith.constant 0 : index
        %c0_35 = arith.constant 0 : index
        %47 = vector.load %arg10[%46, %c0_34, %c0_35] : memref<4x1x8xf32, #tpu.memory_space<vmem>>, vector<1x1x8xf32>
        %48 = vector.shape_cast %47 : vector<1x1x8xf32> to vector<1x8xf32>
        %49 = vector.broadcast %48 : vector<1x8xf32> to vector<8x8xf32>
        %50 = arith.addf %45, %49 : vector<8x8xf32>
        %51 = arith.index_cast %32 : i32 to index
        %c0_36 = arith.constant 0 : index
        %c0_37 = arith.constant 0 : index
        %52 = vector.load %arg22[%51, %c0_36, %c0_37] : memref<4x8x8xf32, #tpu.memory_space<vmem>>, vector<1x8x8xf32>
        %53 = vector.shape_cast %52 : vector<1x8x8xf32> to vector<8x8xf32>
        %54 = vector.shape_cast %41 : vector<8x8xf32> to vector<1x8x8xf32>
        tpu.vector_store %arg22[%51, %c0_36, %c0_37], %54 {strides = array<i32>} : memref<4x8x8xf32, #tpu.memory_space<vmem>>, vector<1x8x8xf32>,
        %55 = arith.index_cast %32 : i32 to index
        %c0_38 = arith.constant 0 : index
        %c0_39 = arith.constant 0 : index
        %56 = vector.load %arg23[%55, %c0_38, %c0_39] : memref<4x8x8xf32, #tpu.memory_space<vmem>>, vector<1x8x8xf32>
        %57 = vector.shape_cast %56 : vector<1x8x8xf32> to vector<8x8xf32>
        %58 = vector.shape_cast %50 : vector<8x8xf32> to vector<1x8x8xf32>
        tpu.vector_store %arg23[%55, %c0_38, %c0_39], %58 {strides = array<i32>} : memref<4x8x8xf32, #tpu.memory_space<vmem>>, vector<1x8x8xf32>,
      }
      %c4_i32_23 = arith.constant 4 : i32
    } else {
    }
    %c0_i32_2 = arith.constant 0 : i32
    %5 = arith.cmpi eq, %arg2, %c0_i32_2 : i32
    %6 = arith.extui %5 : i1 to i32
    %c0_i32_3 = arith.constant 0 : i32
    %7 = arith.cmpi ne, %6, %c0_i32_3 : i32
    scf.if %7 {
      %c0_19 = arith.constant 0 : index
      %c0_20 = arith.constant 0 : index
      %c0_21 = arith.constant 0 : index
      %28 = vector.load %arg4[%c0_19, %c0_20, %c0_21] : memref<1x8x32xf32, #tpu.memory_space<vmem>>, vector<1x8x32xf32>
      %29 = vector.shape_cast %28 : vector<1x8x32xf32> to vector<8x32xf32>
      %cst_22 = arith.constant 0.000000e+00 : f32
      %30 = vector.broadcast %cst_22 : f32 to vector<8x32xf32>
      %c0_i32_23 = arith.constant 0 : i32
      %31 = arith.index_cast %c0_i32_23 : i32 to index
      %c0_24 = arith.constant 0 : index
      %c0_25 = arith.constant 0 : index
      %32 = vector.load %arg5[%31, %c0_24, %c0_25] : memref<4x32x8xf32, #tpu.memory_space<vmem>>, vector<1x32x8xf32>
      %33 = vector.shape_cast %32 : vector<1x32x8xf32> to vector<32x8xf32>
      %cst_26 = arith.constant dense<0.000000e+00> : vector<8x8xf32>
      %34 = tpu.matmul %29, %33, %cst_26 {dimension_numbers = #tpu.dot_dimension_numbers<[1], [0], [0], [1], [0, 0, 1, 1], [], []>} : vector<8x32xf32>, vector<32x8xf32>, vector<8x8xf32> -> vector<8x8xf32>
      %35 = arith.index_cast %c0_i32_23 : i32 to index
      %c0_27 = arith.constant 0 : index
      %c0_28 = arith.constant 0 : index
      %36 = vector.load %arg6[%35, %c0_27, %c0_28] : memref<4x1x8xf32, #tpu.memory_space<vmem>>, vector<1x1x8xf32>
      %37 = vector.shape_cast %36 : vector<1x1x8xf32> to vector<1x8xf32>
      %38 = vector.broadcast %37 : vector<1x8xf32> to vector<8x8xf32>
      %39 = arith.addf %34, %38 : vector<8x8xf32>
      %cst_29 = arith.constant 0.353553385 : f32
      %40 = vector.broadcast %cst_29 : f32 to vector<8x8xf32>
      %41 = arith.mulf %39, %40 : vector<8x8xf32>
      %42 = arith.index_cast %c0_i32_23 : i32 to index
      %c0_30 = arith.constant 0 : index
      %c0_31 = arith.constant 0 : index
      %43 = vector.load %arg22[%42, %c0_30, %c0_31] : memref<4x8x8xf32, #tpu.memory_space<vmem>>, vector<1x8x8xf32>
      %44 = vector.shape_cast %43 : vector<1x8x8xf32> to vector<8x8xf32>
      %cst_32 = arith.constant dense<0.000000e+00> : vector<8x8xf32>
      %45 = tpu.matmul %41, %44, %cst_32 {dimension_numbers = #tpu.dot_dimension_numbers<[1], [1], [0], [0], [0, 0, 1, 0], [], []>} : vector<8x8xf32>, vector<8x8xf32>, vector<8x8xf32> -> vector<8x8xf32>
      %cst_33 = arith.constant dense<0xFF800000> : vector<8xf32>
      %46 = vector.multi_reduction <maximumf>, %45, %cst_33 [1] : vector<8x8xf32> to vector<8xf32>
      %47 = vector.shape_cast %46 : vector<8xf32> to vector<8x1xf32>
      %48 = vector.broadcast %47 : vector<8x1xf32> to vector<8x8xf32>
      %49 = arith.subf %45, %48 : vector<8x8xf32>
      %50 = math.exp %49 : vector<8x8xf32>
      %cst_34 = arith.constant dense<0.000000e+00> : vector<8xf32>
      %51 = vector.multi_reduction <add>, %50, %cst_34 [1] : vector<8x8xf32> to vector<8xf32>
      %52 = vector.shape_cast %51 : vector<8xf32> to vector<8x1xf32>
      %53 = tpu.reciprocal %52 {approx = true} : vector<8x1xf32> -> vector<8x1xf32>
      %54 = vector.broadcast %53 : vector<8x1xf32> to vector<8x8xf32>
      %55 = arith.mulf %50, %54 : vector<8x8xf32>
      %56 = arith.index_cast %c0_i32_23 : i32 to index
      %c0_35 = arith.constant 0 : index
      %c0_36 = arith.constant 0 : index
      %57 = vector.load %arg23[%56, %c0_35, %c0_36] : memref<4x8x8xf32, #tpu.memory_space<vmem>>, vector<1x8x8xf32>
      %58 = vector.shape_cast %57 : vector<1x8x8xf32> to vector<8x8xf32>
      %cst_37 = arith.constant dense<0.000000e+00> : vector<8x8xf32>
      %59 = tpu.matmul %55, %58, %cst_37 {dimension_numbers = #tpu.dot_dimension_numbers<[1], [0], [0], [1], [0, 0, 1, 1], [], []>} : vector<8x8xf32>, vector<8x8xf32>, vector<8x8xf32> -> vector<8x8xf32>
      %60 = arith.index_cast %c0_i32_23 : i32 to index
      %c0_38 = arith.constant 0 : index
      %c0_39 = arith.constant 0 : index
      %61 = vector.load %arg11[%60, %c0_38, %c0_39] : memref<4x8x32xf32, #tpu.memory_space<vmem>>, vector<1x8x32xf32>
      %62 = vector.shape_cast %61 : vector<1x8x32xf32> to vector<8x32xf32>
      %cst_40 = arith.constant dense<0.000000e+00> : vector<8x32xf32>
      %63 = tpu.matmul %59, %62, %cst_40 {dimension_numbers = #tpu.dot_dimension_numbers<[1], [0], [0], [1], [0, 0, 1, 1], [], []>} : vector<8x8xf32>, vector<8x32xf32>, vector<8x32xf32> -> vector<8x32xf32>
      %64 = arith.addf %30, %63 : vector<8x32xf32>
      %c1_i32 = arith.constant 1 : i32
      %65 = arith.index_cast %c1_i32 : i32 to index
      %c0_41 = arith.constant 0 : index
      %c0_42 = arith.constant 0 : index
      %66 = vector.load %arg5[%65, %c0_41, %c0_42] : memref<4x32x8xf32, #tpu.memory_space<vmem>>, vector<1x32x8xf32>
      %67 = vector.shape_cast %66 : vector<1x32x8xf32> to vector<32x8xf32>
      %cst_43 = arith.constant dense<0.000000e+00> : vector<8x8xf32>
      %68 = tpu.matmul %29, %67, %cst_43 {dimension_numbers = #tpu.dot_dimension_numbers<[1], [0], [0], [1], [0, 0, 1, 1], [], []>} : vector<8x32xf32>, vector<32x8xf32>, vector<8x8xf32> -> vector<8x8xf32>
      %69 = arith.index_cast %c1_i32 : i32 to index
      %c0_44 = arith.constant 0 : index
      %c0_45 = arith.constant 0 : index
      %70 = vector.load %arg6[%69, %c0_44, %c0_45] : memref<4x1x8xf32, #tpu.memory_space<vmem>>, vector<1x1x8xf32>
      %71 = vector.shape_cast %70 : vector<1x1x8xf32> to vector<1x8xf32>
      %72 = vector.broadcast %71 : vector<1x8xf32> to vector<8x8xf32>
      %73 = arith.addf %68, %72 : vector<8x8xf32>
      %cst_46 = arith.constant 0.353553385 : f32
      %74 = vector.broadcast %cst_46 : f32 to vector<8x8xf32>
      %75 = arith.mulf %73, %74 : vector<8x8xf32>
      %76 = arith.index_cast %c1_i32 : i32 to index
      %c0_47 = arith.constant 0 : index
      %c0_48 = arith.constant 0 : index
      %77 = vector.load %arg22[%76, %c0_47, %c0_48] : memref<4x8x8xf32, #tpu.memory_space<vmem>>, vector<1x8x8xf32>
      %78 = vector.shape_cast %77 : vector<1x8x8xf32> to vector<8x8xf32>
      %cst_49 = arith.constant dense<0.000000e+00> : vector<8x8xf32>
      %79 = tpu.matmul %75, %78, %cst_49 {dimension_numbers = #tpu.dot_dimension_numbers<[1], [1], [0], [0], [0, 0, 1, 0], [], []>} : vector<8x8xf32>, vector<8x8xf32>, vector<8x8xf32> -> vector<8x8xf32>
      %cst_50 = arith.constant dense<0xFF800000> : vector<8xf32>
      %80 = vector.multi_reduction <maximumf>, %79, %cst_50 [1] : vector<8x8xf32> to vector<8xf32>
      %81 = vector.shape_cast %80 : vector<8xf32> to vector<8x1xf32>
      %82 = vector.broadcast %81 : vector<8x1xf32> to vector<8x8xf32>
      %83 = arith.subf %79, %82 : vector<8x8xf32>
      %84 = math.exp %83 : vector<8x8xf32>
      %cst_51 = arith.constant dense<0.000000e+00> : vector<8xf32>
      %85 = vector.multi_reduction <add>, %84, %cst_51 [1] : vector<8x8xf32> to vector<8xf32>
      %86 = vector.shape_cast %85 : vector<8xf32> to vector<8x1xf32>
      %87 = tpu.reciprocal %86 {approx = true} : vector<8x1xf32> -> vector<8x1xf32>
      %88 = vector.broadcast %87 : vector<8x1xf32> to vector<8x8xf32>
      %89 = arith.mulf %84, %88 : vector<8x8xf32>
      %90 = arith.index_cast %c1_i32 : i32 to index
      %c0_52 = arith.constant 0 : index
      %c0_53 = arith.constant 0 : index
      %91 = vector.load %arg23[%90, %c0_52, %c0_53] : memref<4x8x8xf32, #tpu.memory_space<vmem>>, vector<1x8x8xf32>
      %92 = vector.shape_cast %91 : vector<1x8x8xf32> to vector<8x8xf32>
      %cst_54 = arith.constant dense<0.000000e+00> : vector<8x8xf32>
      %93 = tpu.matmul %89, %92, %cst_54 {dimension_numbers = #tpu.dot_dimension_numbers<[1], [0], [0], [1], [0, 0, 1, 1], [], []>} : vector<8x8xf32>, vector<8x8xf32>, vector<8x8xf32> -> vector<8x8xf32>
      %94 = arith.index_cast %c1_i32 : i32 to index
      %c0_55 = arith.constant 0 : index
      %c0_56 = arith.constant 0 : index
      %95 = vector.load %arg11[%94, %c0_55, %c0_56] : memref<4x8x32xf32, #tpu.memory_space<vmem>>, vector<1x8x32xf32>
      %96 = vector.shape_cast %95 : vector<1x8x32xf32> to vector<8x32xf32>
      %cst_57 = arith.constant dense<0.000000e+00> : vector<8x32xf32>
      %97 = tpu.matmul %93, %96, %cst_57 {dimension_numbers = #tpu.dot_dimension_numbers<[1], [0], [0], [1], [0, 0, 1, 1], [], []>} : vector<8x8xf32>, vector<8x32xf32>, vector<8x32xf32> -> vector<8x32xf32>
      %98 = arith.addf %64, %97 : vector<8x32xf32>
      %c2_i32 = arith.constant 2 : i32
      %99 = arith.index_cast %c2_i32 : i32 to index
      %c0_58 = arith.constant 0 : index
      %c0_59 = arith.constant 0 : index
      %100 = vector.load %arg5[%99, %c0_58, %c0_59] : memref<4x32x8xf32, #tpu.memory_space<vmem>>, vector<1x32x8xf32>
      %101 = vector.shape_cast %100 : vector<1x32x8xf32> to vector<32x8xf32>
      %cst_60 = arith.constant dense<0.000000e+00> : vector<8x8xf32>
      %102 = tpu.matmul %29, %101, %cst_60 {dimension_numbers = #tpu.dot_dimension_numbers<[1], [0], [0], [1], [0, 0, 1, 1], [], []>} : vector<8x32xf32>, vector<32x8xf32>, vector<8x8xf32> -> vector<8x8xf32>
      %103 = arith.index_cast %c2_i32 : i32 to index
      %c0_61 = arith.constant 0 : index
      %c0_62 = arith.constant 0 : index
      %104 = vector.load %arg6[%103, %c0_61, %c0_62] : memref<4x1x8xf32, #tpu.memory_space<vmem>>, vector<1x1x8xf32>
      %105 = vector.shape_cast %104 : vector<1x1x8xf32> to vector<1x8xf32>
      %106 = vector.broadcast %105 : vector<1x8xf32> to vector<8x8xf32>
      %107 = arith.addf %102, %106 : vector<8x8xf32>
      %cst_63 = arith.constant 0.353553385 : f32
      %108 = vector.broadcast %cst_63 : f32 to vector<8x8xf32>
      %109 = arith.mulf %107, %108 : vector<8x8xf32>
      %110 = arith.index_cast %c2_i32 : i32 to index
      %c0_64 = arith.constant 0 : index
      %c0_65 = arith.constant 0 : index
      %111 = vector.load %arg22[%110, %c0_64, %c0_65] : memref<4x8x8xf32, #tpu.memory_space<vmem>>, vector<1x8x8xf32>
      %112 = vector.shape_cast %111 : vector<1x8x8xf32> to vector<8x8xf32>
      %cst_66 = arith.constant dense<0.000000e+00> : vector<8x8xf32>
      %113 = tpu.matmul %109, %112, %cst_66 {dimension_numbers = #tpu.dot_dimension_numbers<[1], [1], [0], [0], [0, 0, 1, 0], [], []>} : vector<8x8xf32>, vector<8x8xf32>, vector<8x8xf32> -> vector<8x8xf32>
      %cst_67 = arith.constant dense<0xFF800000> : vector<8xf32>
      %114 = vector.multi_reduction <maximumf>, %113, %cst_67 [1] : vector<8x8xf32> to vector<8xf32>
      %115 = vector.shape_cast %114 : vector<8xf32> to vector<8x1xf32>
      %116 = vector.broadcast %115 : vector<8x1xf32> to vector<8x8xf32>
      %117 = arith.subf %113, %116 : vector<8x8xf32>
      %118 = math.exp %117 : vector<8x8xf32>
      %cst_68 = arith.constant dense<0.000000e+00> : vector<8xf32>
      %119 = vector.multi_reduction <add>, %118, %cst_68 [1] : vector<8x8xf32> to vector<8xf32>
      %120 = vector.shape_cast %119 : vector<8xf32> to vector<8x1xf32>
      %121 = tpu.reciprocal %120 {approx = true} : vector<8x1xf32> -> vector<8x1xf32>
      %122 = vector.broadcast %121 : vector<8x1xf32> to vector<8x8xf32>
      %123 = arith.mulf %118, %122 : vector<8x8xf32>
      %124 = arith.index_cast %c2_i32 : i32 to index
      %c0_69 = arith.constant 0 : index
      %c0_70 = arith.constant 0 : index
      %125 = vector.load %arg23[%124, %c0_69, %c0_70] : memref<4x8x8xf32, #tpu.memory_space<vmem>>, vector<1x8x8xf32>
      %126 = vector.shape_cast %125 : vector<1x8x8xf32> to vector<8x8xf32>
      %cst_71 = arith.constant dense<0.000000e+00> : vector<8x8xf32>
      %127 = tpu.matmul %123, %126, %cst_71 {dimension_numbers = #tpu.dot_dimension_numbers<[1], [0], [0], [1], [0, 0, 1, 1], [], []>} : vector<8x8xf32>, vector<8x8xf32>, vector<8x8xf32> -> vector<8x8xf32>
      %128 = arith.index_cast %c2_i32 : i32 to index
      %c0_72 = arith.constant 0 : index
      %c0_73 = arith.constant 0 : index
      %129 = vector.load %arg11[%128, %c0_72, %c0_73] : memref<4x8x32xf32, #tpu.memory_space<vmem>>, vector<1x8x32xf32>
      %130 = vector.shape_cast %129 : vector<1x8x32xf32> to vector<8x32xf32>
      %cst_74 = arith.constant dense<0.000000e+00> : vector<8x32xf32>
      %131 = tpu.matmul %127, %130, %cst_74 {dimension_numbers = #tpu.dot_dimension_numbers<[1], [0], [0], [1], [0, 0, 1, 1], [], []>} : vector<8x8xf32>, vector<8x32xf32>, vector<8x32xf32> -> vector<8x32xf32>
      %132 = arith.addf %98, %131 : vector<8x32xf32>
      %c3_i32 = arith.constant 3 : i32
      %133 = arith.index_cast %c3_i32 : i32 to index
      %c0_75 = arith.constant 0 : index
      %c0_76 = arith.constant 0 : index
      %134 = vector.load %arg5[%133, %c0_75, %c0_76] : memref<4x32x8xf32, #tpu.memory_space<vmem>>, vector<1x32x8xf32>
      %135 = vector.shape_cast %134 : vector<1x32x8xf32> to vector<32x8xf32>
      %cst_77 = arith.constant dense<0.000000e+00> : vector<8x8xf32>
      %136 = tpu.matmul %29, %135, %cst_77 {dimension_numbers = #tpu.dot_dimension_numbers<[1], [0], [0], [1], [0, 0, 1, 1], [], []>} : vector<8x32xf32>, vector<32x8xf32>, vector<8x8xf32> -> vector<8x8xf32>
      %137 = arith.index_cast %c3_i32 : i32 to index
      %c0_78 = arith.constant 0 : index
      %c0_79 = arith.constant 0 : index
      %138 = vector.load %arg6[%137, %c0_78, %c0_79] : memref<4x1x8xf32, #tpu.memory_space<vmem>>, vector<1x1x8xf32>
      %139 = vector.shape_cast %138 : vector<1x1x8xf32> to vector<1x8xf32>
      %140 = vector.broadcast %139 : vector<1x8xf32> to vector<8x8xf32>
      %141 = arith.addf %136, %140 : vector<8x8xf32>
      %cst_80 = arith.constant 0.353553385 : f32
      %142 = vector.broadcast %cst_80 : f32 to vector<8x8xf32>
      %143 = arith.mulf %141, %142 : vector<8x8xf32>
      %144 = arith.index_cast %c3_i32 : i32 to index
      %c0_81 = arith.constant 0 : index
      %c0_82 = arith.constant 0 : index
      %145 = vector.load %arg22[%144, %c0_81, %c0_82] : memref<4x8x8xf32, #tpu.memory_space<vmem>>, vector<1x8x8xf32>
      %146 = vector.shape_cast %145 : vector<1x8x8xf32> to vector<8x8xf32>
      %cst_83 = arith.constant dense<0.000000e+00> : vector<8x8xf32>
      %147 = tpu.matmul %143, %146, %cst_83 {dimension_numbers = #tpu.dot_dimension_numbers<[1], [1], [0], [0], [0, 0, 1, 0], [], []>} : vector<8x8xf32>, vector<8x8xf32>, vector<8x8xf32> -> vector<8x8xf32>
      %cst_84 = arith.constant dense<0xFF800000> : vector<8xf32>
      %148 = vector.multi_reduction <maximumf>, %147, %cst_84 [1] : vector<8x8xf32> to vector<8xf32>
      %149 = vector.shape_cast %148 : vector<8xf32> to vector<8x1xf32>
      %150 = vector.broadcast %149 : vector<8x1xf32> to vector<8x8xf32>
      %151 = arith.subf %147, %150 : vector<8x8xf32>
      %152 = math.exp %151 : vector<8x8xf32>
      %cst_85 = arith.constant dense<0.000000e+00> : vector<8xf32>
      %153 = vector.multi_reduction <add>, %152, %cst_85 [1] : vector<8x8xf32> to vector<8xf32>
      %154 = vector.shape_cast %153 : vector<8xf32> to vector<8x1xf32>
      %155 = tpu.reciprocal %154 {approx = true} : vector<8x1xf32> -> vector<8x1xf32>
      %156 = vector.broadcast %155 : vector<8x1xf32> to vector<8x8xf32>
      %157 = arith.mulf %152, %156 : vector<8x8xf32>
      %158 = arith.index_cast %c3_i32 : i32 to index
      %c0_86 = arith.constant 0 : index
      %c0_87 = arith.constant 0 : index
      %159 = vector.load %arg23[%158, %c0_86, %c0_87] : memref<4x8x8xf32, #tpu.memory_space<vmem>>, vector<1x8x8xf32>
      %160 = vector.shape_cast %159 : vector<1x8x8xf32> to vector<8x8xf32>
      %cst_88 = arith.constant dense<0.000000e+00> : vector<8x8xf32>
      %161 = tpu.matmul %157, %160, %cst_88 {dimension_numbers = #tpu.dot_dimension_numbers<[1], [0], [0], [1], [0, 0, 1, 1], [], []>} : vector<8x8xf32>, vector<8x8xf32>, vector<8x8xf32> -> vector<8x8xf32>
      %162 = arith.index_cast %c3_i32 : i32 to index
      %c0_89 = arith.constant 0 : index
      %c0_90 = arith.constant 0 : index
      %163 = vector.load %arg11[%162, %c0_89, %c0_90] : memref<4x8x32xf32, #tpu.memory_space<vmem>>, vector<1x8x32xf32>
      %164 = vector.shape_cast %163 : vector<1x8x32xf32> to vector<8x32xf32>
      %cst_91 = arith.constant dense<0.000000e+00> : vector<8x32xf32>
      %165 = tpu.matmul %161, %164, %cst_91 {dimension_numbers = #tpu.dot_dimension_numbers<[1], [0], [0], [1], [0, 0, 1, 1], [], []>} : vector<8x8xf32>, vector<8x32xf32>, vector<8x32xf32> -> vector<8x32xf32>
      %166 = arith.addf %132, %165 : vector<8x32xf32>
      %c4_i32 = arith.constant 4 : i32
      %c0_92 = arith.constant 0 : index
      %c0_93 = arith.constant 0 : index
      %167 = vector.load %arg12[%c0_92, %c0_93] : memref<1x32xf32, #tpu.memory_space<vmem>>, vector<1x32xf32>
      %168 = vector.broadcast %167 : vector<1x32xf32> to vector<8x32xf32>
      %169 = arith.addf %166, %168 : vector<8x32xf32>
      %170 = arith.addf %29, %169 : vector<8x32xf32>
      %c0_94 = arith.constant 0 : index
      %c0_95 = arith.constant 0 : index
      %171 = vector.load %arg13[%c0_94, %c0_95] : memref<1x32xf32, #tpu.memory_space<vmem>>, vector<1x32xf32>
      %c0_96 = arith.constant 0 : index
      %c0_97 = arith.constant 0 : index
      %172 = vector.load %arg14[%c0_96, %c0_97] : memref<1x32xf32, #tpu.memory_space<vmem>>, vector<1x32xf32>
      %cst_98 = arith.constant dense<0.000000e+00> : vector<8xf32>
      %173 = vector.multi_reduction <add>, %170, %cst_98 [1] : vector<8x32xf32> to vector<8xf32>
      %174 = vector.shape_cast %173 : vector<8xf32> to vector<8x1xf32>
      %cst_99 = arith.constant 3.200000e+01 : f32
      %175 = vector.broadcast %cst_99 : f32 to vector<8x1xf32>
      %176 = arith.divf %174, %175 : vector<8x1xf32>
      %177 = vector.broadcast %176 : vector<8x1xf32> to vector<8x32xf32>
      %178 = arith.subf %170, %177 : vector<8x32xf32>
      %179 = arith.mulf %178, %178 : vector<8x32xf32>
      %cst_100 = arith.constant dense<0.000000e+00> : vector<8xf32>
      %180 = vector.multi_reduction <add>, %179, %cst_100 [1] : vector<8x32xf32> to vector<8xf32>
      %181 = vector.shape_cast %180 : vector<8xf32> to vector<8x1xf32>
      %cst_101 = arith.constant 3.200000e+01 : f32
      %182 = vector.broadcast %cst_101 : f32 to vector<8x1xf32>
      %183 = arith.divf %181, %182 : vector<8x1xf32>
      %cst_102 = arith.constant 9.99999974E-6 : f32
      %184 = vector.broadcast %cst_102 : f32 to vector<8x1xf32>
      %185 = arith.addf %183, %184 : vector<8x1xf32>
      %186 = math.rsqrt %185 : vector<8x1xf32>
      %187 = vector.broadcast %186 : vector<8x1xf32> to vector<8x32xf32>
      %188 = arith.mulf %178, %187 : vector<8x32xf32>
      %189 = vector.broadcast %171 : vector<1x32xf32> to vector<8x32xf32>
      %190 = arith.mulf %188, %189 : vector<8x32xf32>
      %191 = vector.broadcast %172 : vector<1x32xf32> to vector<8x32xf32>
      %192 = arith.addf %190, %191 : vector<8x32xf32>
      %c0_103 = arith.constant 0 : index
      %c0_104 = arith.constant 0 : index
      %193 = vector.load %arg24[%c0_103, %c0_104] : memref<8x32xf32, #tpu.memory_space<vmem>>, vector<8x32xf32>
      tpu.vector_store %arg24[%c0_103, %c0_104], %192 {strides = array<i32>} : memref<8x32xf32, #tpu.memory_space<vmem>>, vector<8x32xf32>,
      %cst_105 = arith.constant 0.000000e+00 : f32
      %194 = vector.broadcast %cst_105 : f32 to vector<8x32xf32>
      %c0_106 = arith.constant 0 : index
      %c0_107 = arith.constant 0 : index
      %195 = vector.load %arg25[%c0_106, %c0_107] : memref<8x32xf32, #tpu.memory_space<vmem>>, vector<8x32xf32>
      tpu.vector_store %arg25[%c0_106, %c0_107], %194 {strides = array<i32>} : memref<8x32xf32, #tpu.memory_space<vmem>>, vector<8x32xf32>,
    } else {
    }
    %c0 = arith.constant 0 : index
    %c0_4 = arith.constant 0 : index
    %8 = vector.load %arg24[%c0, %c0_4] : memref<8x32xf32, #tpu.memory_space<vmem>>, vector<8x32xf32>
    %c0_5 = arith.constant 0 : index
    %c0_6 = arith.constant 0 : index
    %9 = vector.load %arg15[%c0_5, %c0_6] : memref<32x128xf32, #tpu.memory_space<vmem>>, vector<32x128xf32>
    %cst = arith.constant dense<0.000000e+00> : vector<8x128xf32>
    %10 = tpu.matmul %8, %9, %cst {dimension_numbers = #tpu.dot_dimension_numbers<[1], [0], [0], [1], [0, 0, 1, 1], [], []>} : vector<8x32xf32>, vector<32x128xf32>, vector<8x128xf32> -> vector<8x128xf32>
    %c0_7 = arith.constant 0 : index
    %c0_8 = arith.constant 0 : index
    %11 = vector.load %arg16[%c0_7, %c0_8] : memref<1x128xf32, #tpu.memory_space<vmem>>, vector<1x128xf32>
    %12 = vector.broadcast %11 : vector<1x128xf32> to vector<8x128xf32>
    %13 = arith.addf %10, %12 : vector<8x128xf32>
    %14 = arith.negf %13 : vector<8x128xf32>
    %15 = math.exp %14 : vector<8x128xf32>
    %cst_9 = arith.constant 1.000000e+00 : f32
    %16 = vector.broadcast %cst_9 : f32 to vector<8x128xf32>
    %17 = arith.addf %16, %15 : vector<8x128xf32>
    %18 = arith.divf %16, %17 : vector<8x128xf32>
    %19 = arith.mulf %13, %18 : vector<8x128xf32>
    %c0_10 = arith.constant 0 : index
    %c0_11 = arith.constant 0 : index
    %20 = vector.load %arg25[%c0_10, %c0_11] : memref<8x32xf32, #tpu.memory_space<vmem>>, vector<8x32xf32>
    %c0_12 = arith.constant 0 : index
    %c0_13 = arith.constant 0 : index
    %21 = vector.load %arg17[%c0_12, %c0_13] : memref<128x32xf32, #tpu.memory_space<vmem>>, vector<128x32xf32>
    %cst_14 = arith.constant dense<0.000000e+00> : vector<8x32xf32>
    %22 = tpu.matmul %19, %21, %cst_14 {dimension_numbers = #tpu.dot_dimension_numbers<[1], [0], [0], [1], [0, 0, 1, 1], [], []>} : vector<8x128xf32>, vector<128x32xf32>, vector<8x32xf32> -> vector<8x32xf32>
    %23 = arith.addf %20, %22 : vector<8x32xf32>
    %c0_15 = arith.constant 0 : index
    %c0_16 = arith.constant 0 : index
    %24 = vector.load %arg25[%c0_15, %c0_16] : memref<8x32xf32, #tpu.memory_space<vmem>>, vector<8x32xf32>
    tpu.vector_store %arg25[%c0_15, %c0_16], %23 {strides = array<i32>} : memref<8x32xf32, #tpu.memory_space<vmem>>, vector<8x32xf32>,
    %c0_i32_17 = arith.constant 0 : i32
    %25 = arith.cmpi eq, %arg2, %c0_i32_17 : i32
    %26 = arith.extui %25 : i1 to i32
    %c0_i32_18 = arith.constant 0 : i32
    %27 = arith.cmpi ne, %26, %c0_i32_18 : i32
    scf.if %27 {
      %c0_19 = arith.constant 0 : index
      %c0_20 = arith.constant 0 : index
      %28 = vector.load %arg25[%c0_19, %c0_20] : memref<8x32xf32, #tpu.memory_space<vmem>>, vector<8x32xf32>
      %c0_21 = arith.constant 0 : index
      %c0_22 = arith.constant 0 : index
      %29 = vector.load %arg18[%c0_21, %c0_22] : memref<1x32xf32, #tpu.memory_space<vmem>>, vector<1x32xf32>
      %30 = vector.broadcast %29 : vector<1x32xf32> to vector<8x32xf32>
      %31 = arith.addf %28, %30 : vector<8x32xf32>
      %c0_23 = arith.constant 0 : index
      %c0_24 = arith.constant 0 : index
      %32 = vector.load %arg24[%c0_23, %c0_24] : memref<8x32xf32, #tpu.memory_space<vmem>>, vector<8x32xf32>
      %33 = arith.addf %32, %31 : vector<8x32xf32>
      %c0_25 = arith.constant 0 : index
      %c0_26 = arith.constant 0 : index
      %34 = vector.load %arg19[%c0_25, %c0_26] : memref<1x32xf32, #tpu.memory_space<vmem>>, vector<1x32xf32>
      %c0_27 = arith.constant 0 : index
      %c0_28 = arith.constant 0 : index
      %35 = vector.load %arg20[%c0_27, %c0_28] : memref<1x32xf32, #tpu.memory_space<vmem>>, vector<1x32xf32>
      %cst_29 = arith.constant dense<0.000000e+00> : vector<8xf32>
      %36 = vector.multi_reduction <add>, %33, %cst_29 [1] : vector<8x32xf32> to vector<8xf32>
      %37 = vector.shape_cast %36 : vector<8xf32> to vector<8x1xf32>
      %cst_30 = arith.constant 3.200000e+01 : f32
      %38 = vector.broadcast %cst_30 : f32 to vector<8x1xf32>
      %39 = arith.divf %37, %38 : vector<8x1xf32>
      %40 = vector.broadcast %39 : vector<8x1xf32> to vector<8x32xf32>
      %41 = arith.subf %33, %40 : vector<8x32xf32>
      %42 = arith.mulf %41, %41 : vector<8x32xf32>
      %cst_31 = arith.constant dense<0.000000e+00> : vector<8xf32>
      %43 = vector.multi_reduction <add>, %42, %cst_31 [1] : vector<8x32xf32> to vector<8xf32>
      %44 = vector.shape_cast %43 : vector<8xf32> to vector<8x1xf32>
      %cst_32 = arith.constant 3.200000e+01 : f32
      %45 = vector.broadcast %cst_32 : f32 to vector<8x1xf32>
      %46 = arith.divf %44, %45 : vector<8x1xf32>
      %cst_33 = arith.constant 9.99999974E-6 : f32
      %47 = vector.broadcast %cst_33 : f32 to vector<8x1xf32>
      %48 = arith.addf %46, %47 : vector<8x1xf32>
      %49 = math.rsqrt %48 : vector<8x1xf32>
      %50 = vector.broadcast %49 : vector<8x1xf32> to vector<8x32xf32>
      %51 = arith.mulf %41, %50 : vector<8x32xf32>
      %52 = vector.broadcast %34 : vector<1x32xf32> to vector<8x32xf32>
      %53 = arith.mulf %51, %52 : vector<8x32xf32>
      %54 = vector.broadcast %35 : vector<1x32xf32> to vector<8x32xf32>
      %55 = arith.addf %53, %54 : vector<8x32xf32>
      %c0_34 = arith.constant 0 : index
      %c0_35 = arith.constant 0 : index
      %c0_36 = arith.constant 0 : index
      %56 = vector.load %arg21[%c0_34, %c0_35, %c0_36] : memref<1x8x32xf32, #tpu.memory_space<vmem>>, vector<1x8x32xf32>
      %57 = vector.shape_cast %56 : vector<1x8x32xf32> to vector<8x32xf32>
      %58 = vector.shape_cast %55 : vector<8x32xf32> to vector<1x8x32xf32>
      tpu.vector_store %arg21[%c0_34, %c0_35, %c0_36], %58 {strides = array<i32>} : memref<1x8x32xf32, #tpu.memory_space<vmem>>, vector<1x8x32xf32>,
    } else {
    }
    return
  }
  func.func @transform_0(%arg0: i32, %arg1: i32, %arg2: i32) -> (i32, i32, i32) {
    %c0_i32 = arith.constant 0 : i32
    %c0_i32_0 = arith.constant 0 : i32
    %c0_i32_1 = arith.constant 0 : i32
    return %arg0, %c0_i32, %c0_i32_0 : i32, i32, i32
  }
  func.func @transform_1(%arg0: i32, %arg1: i32, %arg2: i32) -> (i32, i32, i32) {
    %c0_i32 = arith.constant 0 : i32
    %c0_i32_0 = arith.constant 0 : i32
    return %arg0, %arg1, %c0_i32 : i32, i32, i32
  }
  func.func @transform_2(%arg0: i32, %arg1: i32, %arg2: i32) -> (i32, i32, i32) {
    %c0_i32 = arith.constant 0 : i32
    %c0_i32_0 = arith.constant 0 : i32
    %c0_i32_1 = arith.constant 0 : i32
    %c0_i32_2 = arith.constant 0 : i32
    return %c0_i32, %c0_i32_0, %c0_i32_1 : i32, i32, i32
  }
  func.func @transform_3(%arg0: i32, %arg1: i32, %arg2: i32) -> (i32, i32, i32) {
    %c0_i32 = arith.constant 0 : i32
    %c0_i32_0 = arith.constant 0 : i32
    %c0_i32_1 = arith.constant 0 : i32
    %c0_i32_2 = arith.constant 0 : i32
    return %c0_i32, %c0_i32_0, %c0_i32_1 : i32, i32, i32
  }
  func.func @transform_4(%arg0: i32, %arg1: i32, %arg2: i32) -> (i32, i32, i32) {
    %c0_i32 = arith.constant 0 : i32
    %c0_i32_0 = arith.constant 0 : i32
    %c0_i32_1 = arith.constant 0 : i32
    %c0_i32_2 = arith.constant 0 : i32
    return %c0_i32, %c0_i32_0, %c0_i32_1 : i32, i32, i32
  }
  func.func @transform_5(%arg0: i32, %arg1: i32, %arg2: i32) -> (i32, i32, i32) {
    %c0_i32 = arith.constant 0 : i32
    %c0_i32_0 = arith.constant 0 : i32
    %c0_i32_1 = arith.constant 0 : i32
    %c0_i32_2 = arith.constant 0 : i32
    return %c0_i32, %c0_i32_0, %c0_i32_1 : i32, i32, i32
  }
  func.func @transform_6(%arg0: i32, %arg1: i32, %arg2: i32) -> (i32, i32, i32) {
    %c0_i32 = arith.constant 0 : i32
    %c0_i32_0 = arith.constant 0 : i32
    %c0_i32_1 = arith.constant 0 : i32
    %c0_i32_2 = arith.constant 0 : i32
    return %c0_i32, %c0_i32_0, %c0_i32_1 : i32, i32, i32
  }
  func.func @transform_7(%arg0: i32, %arg1: i32, %arg2: i32) -> (i32, i32, i32) {
    %c0_i32 = arith.constant 0 : i32
    %c0_i32_0 = arith.constant 0 : i32
    %c0_i32_1 = arith.constant 0 : i32
    %c0_i32_2 = arith.constant 0 : i32
    return %c0_i32, %c0_i32_0, %c0_i32_1 : i32, i32, i32
  }
  func.func @transform_8(%arg0: i32, %arg1: i32, %arg2: i32) -> (i32, i32, i32) {
    %c0_i32 = arith.constant 0 : i32
    %c0_i32_0 = arith.constant 0 : i32
    %c0_i32_1 = arith.constant 0 : i32
    %c0_i32_2 = arith.constant 0 : i32
    return %c0_i32, %c0_i32_0, %c0_i32_1 : i32, i32, i32
  }
  func.func @transform_9(%arg0: i32, %arg1: i32, %arg2: i32) -> (i32, i32) {
    %c0_i32 = arith.constant 0 : i32
    %c0_i32_0 = arith.constant 0 : i32
    %c0_i32_1 = arith.constant 0 : i32
    return %c0_i32, %c0_i32_0 : i32, i32
  }
  func.func @transform_10(%arg0: i32, %arg1: i32, %arg2: i32) -> (i32, i32) {
    %c0_i32 = arith.constant 0 : i32
    %c0_i32_0 = arith.constant 0 : i32
    %c0_i32_1 = arith.constant 0 : i32
    return %c0_i32, %c0_i32_0 : i32, i32
  }
  func.func @transform_11(%arg0: i32, %arg1: i32, %arg2: i32) -> (i32, i32) {
    %c0_i32 = arith.constant 0 : i32
    %c0_i32_0 = arith.constant 0 : i32
    %c0_i32_1 = arith.constant 0 : i32
    return %c0_i32, %c0_i32_0 : i32, i32
  }
  func.func @transform_12(%arg0: i32, %arg1: i32, %arg2: i32) -> (i32, i32) {
    %c0_i32 = arith.constant 0 : i32
    %c0_i32_0 = arith.constant 0 : i32
    return %c0_i32, %arg2 : i32, i32
  }
  func.func @transform_13(%arg0: i32, %arg1: i32, %arg2: i32) -> (i32, i32) {
    %c0_i32 = arith.constant 0 : i32
    %c0_i32_0 = arith.constant 0 : i32
    return %c0_i32, %arg2 : i32, i32
  }
  func.func @transform_14(%arg0: i32, %arg1: i32, %arg2: i32) -> (i32, i32) {
    %c0_i32 = arith.constant 0 : i32
    %c0_i32_0 = arith.constant 0 : i32
    return %arg2, %c0_i32 : i32, i32
  }
  func.func @transform_15(%arg0: i32, %arg1: i32, %arg2: i32) -> (i32, i32) {
    %c0_i32 = arith.constant 0 : i32
    %c0_i32_0 = arith.constant 0 : i32
    %c0_i32_1 = arith.constant 0 : i32
    return %c0_i32, %c0_i32_0 : i32, i32
  }
  func.func @transform_16(%arg0: i32, %arg1: i32, %arg2: i32) -> (i32, i32) {
    %c0_i32 = arith.constant 0 : i32
    %c0_i32_0 = arith.constant 0 : i32
    %c0_i32_1 = arith.constant 0 : i32
    return %c0_i32, %c0_i32_0 : i32, i32
  }
  func.func @transform_17(%arg0: i32, %arg1: i32, %arg2: i32) -> (i32, i32) {
    %c0_i32 = arith.constant 0 : i32
    %c0_i32_0 = arith.constant 0 : i32
    %c0_i32_1 = arith.constant 0 : i32
    return %c0_i32, %c0_i32_0 : i32, i32
  }
  func.func @transform_18(%arg0: i32, %arg1: i32, %arg2: i32) -> (i32, i32, i32) {
    %c0_i32 = arith.constant 0 : i32
    %c0_i32_0 = arith.constant 0 : i32
    return %arg0, %arg1, %c0_i32 : i32, i32, i32
  }
}

</mosaic_0001>

<bundles_post_ra>
// kernel: tpu_custom_call.1
= control target key start
LH: loop header
LB: loop body
LE: loop exit
PB: predicated region body
PF: predicated region fallthrough
CT: control target
= control target key end

     0   :  { %6 = vsyncpa [#allocation3], 0  ;;  %s305_s0 = inlined_call_operand.hbm [shape: f32[8,128], index: 0, kind: input, shape index: {}]   ;;  %s306_s1 = inlined_call_operand.hbm [shape: f32[8,128], index: 1, kind: output, shape index: {}]  }
   0x1   :  { %7 = vsyncpa [#allocation4], 0  ;;  %s258_s6 = smov 0  }
   0x2 LB: > { %s145_s7 = sadd.s32 4294967295, %s244_s6   ;;  %p146_p0 = scmp.ge.s32.totalorder %s244_s6, 1  ;;  %s244_s6 = sphi %s258_s6, %s13_s6  }
   0x3   : > { %p60_p1 = scmp.lt.s32.totalorder %s244_s6, 3  ;;  %p270_p3 = scmp.eq.s32.totalorder %s145_s7, 0 }
   0x4   : > { %s246_s10 = smov [#allocation2]  }
   0x5   : > { %p266_p2 = pnand %p146_p0, %p60_p1  ;;  %s73_s11 = sshll.u32 %s246_s10, 4  ;;  %s74_s11 = int_to_ptr.vmem [resolvable:$true] %s73_s11 }
   0x6   : > { %s191_s12 = scalar_lea.vmem %s74_s11, 128  ;;  %p199_p10 = scmp.lt.s32.totalorder %s74_s11, %s74_s11 }
   0x7   : > { %p162_p4 = pneg %p266_p2  ;;  %p192_p7 = scmp.ne.s32.totalorder %s74_s11, %s191_s12 }
   0x8   : > { %p200_p11 = scmp.lt.s32.totalorder %s191_s12, %s191_s12 }
   0x9   : > { %p163_p5 = pnand %p270_p3, %p162_p4 }
   0xa   : > { %p201_p12 = por %p200_p11, %p199_p10 }
   0xb   : > { %p182_p6 = pneg %p163_p5 }
   0xd   : > { %p194_p8 = pnand %p192_p7, %p182_p6 }
   0xf   : > { %p195_p9 = pneg %p194_p8 }
  0x11   : > { %p202_p13 = pnand %p201_p12, %p195_p9 }
  0x13   : > { %205 = shalt.err (!%p202_p13)
}
  0x14   : > { %165 = dma.hbm_to_vmem [thread:$0]  (!%p163_p5), %s305_s0, 128, %s74_s11, [#allocation3]  }
  0x15   : > { %86 = sbr.rel (%p266_p2) target bundleno = 42 (0x2a), region = 24 }
  0x1a   : > { %235 = dma.done.wait (%p270_p3), [#allocation3], 128  }
  0x1b   : > { %237 = vsyncadd (%p270_p3), [#allocation3], 4294967168  ;;  %s247_s15 = smov [#allocation5]   ;;  %v96_v0 = vld [vmem:[#allocation2] sm:$0xff]  ;;  %p287_p0 = scmp.eq.s32.totalorder %s145_s7, 1 }
  0x1c   : > { %s106_s16 = sshll.u32 %s247_s15, 4  ;;  %v97_v1 = vadd.f32 1.0, %v96_v0  ;;  %s107_s16 = int_to_ptr.vmem [resolvable:$true] %s106_s16 }
  0x1d   : > { %s206_s18 = scalar_lea.vmem %s107_s16, 128  ;;  %p213_p5 = scmp.lt.s32.totalorder %s107_s16, %s107_s16 }
  0x1e   : > { %98 = vst [vmem:[#allocation5] sm:$0xff] %v97_v1  ;;  %p207_p1 = scmp.ne.s32.totalorder %s107_s16, %s206_s18  ;;  %p214_p6 = scmp.lt.s32.totalorder %s206_s18, %s206_s18 }
  0x20   : > { %p208_p2 = pnand %p207_p1, %p287_p0  ;;  %p215_p7 = por %p214_p6, %p213_p5 }
  0x22   : > { %p209_p4 = pneg %p208_p2 }
  0x24   : > { %p216_p3 = pnand %p215_p7, %p209_p4 }
  0x26   : > { %219 = shalt.err (!%p216_p3)
}
  0x27   : > { %159 = dma.vmem_to_hbm [thread:$0]  (%p287_p0), %s107_s16, 128, %s306_s1, [#allocation4]  }
  0x28   : > { %239 = dma.done.wait (%p287_p0), [#allocation4], 128  }
  0x29   : > { %241 = vsyncadd (%p287_p0), [#allocation4], 4294967168 }
  0x2a PF: > { %s13_s6 = sadd.s32 1, %s244_s6  }
  0x2b   : > { %p10_p8 = scmp.ge.s32.totalorder %s13_s6, 4  }
  0x2d   :  { %12 = sbr.rel (!%p10_p8) target bundleno = 2 (0x2), region = 53 }
  0x32   :  { %119 = vsyncpa [#allocation3], 1 }
  0x33   :  { %121 = vsyncpa [#allocation3 + $0x1], 1 }
  0x34   :  { %122 = vsyncpa [#allocation4], 1 }
  0x35   :  { %124 = vsyncpa [#allocation4 + $0x1], 1 }

// kernel: tpu_custom_call.1
= control target key start
LH: loop header
LB: loop body
LE: loop exit
PB: predicated region body
PF: predicated region fallthrough
CT: control target
= control target key end

     0   :  { %s3617_s0 = inlined_call_operand.vmem [shape: f32[2,8,32], index: 0, kind: input, shape index: {}]   ;;  %s3618_s1 = inlined_call_operand.vmem [shape: f32[2,8,32], index: 1, kind: input, shape index: {}]   ;;  %s3619_s2 = inlined_call_operand.vmem [shape: f32[4,32,8], index: 2, kind: input, shape index: {}]   ;;  %s3620_s3 = inlined_call_operand.vmem [shape: f32[4,1,8], index: 3, kind: input, shape index: {}]   ;;  %s3621_s4 = inlined_call_operand.vmem [shape: f32[4,32,8], index: 4, kind: input, shape index: {}]   ;;  %s3622_s5 = inlined_call_operand.vmem [shape: f32[4,1,8], index: 5, kind: input, shape index: {}]   ;;  %s3623_s6 = inlined_call_operand.vmem [shape: f32[4,32,8], index: 6, kind: input, shape index: {}]   ;;  %s3624_s7 = inlined_call_operand.vmem [shape: f32[4,1,8], index: 7, kind: input, shape index: {}]   ;;  %s3625_s8 = inlined_call_operand.vmem [shape: f32[4,8,32], index: 8, kind: input, shape index: {}]   ;;  %s3626_s9 = inlined_call_operand.vmem [shape: f32[1,32], index: 9, kind: input, shape index: {}]   ;;  %s3627_s10 = inlined_call_operand.vmem [shape: f32[1,32], index: 10, kind: input, shape index: {}]   ;;  %s3628_s11 = inlined_call_operand.vmem [shape: f32[1,32], index: 11, kind: input, shape index: {}]   ;;  %s3629_s12 = inlined_call_operand.vmem [shape: f32[32,128], index: 12, kind: input, shape index: {}]   ;;  %s3630_s13 = inlined_call_operand.vmem [shape: f32[1,128], index: 13, kind: input, shape index: {}]   ;;  %s3631_s14 = inlined_call_operand.vmem [shape: f32[128,32], index: 14, kind: input, shape index: {}]   ;;  %s3632_s15 = inlined_call_operand.vmem [shape: f32[1,32], index: 15, kind: input, shape index: {}]   ;;  %s3633_s16 = inlined_call_operand.vmem [shape: f32[1,32], index: 16, kind: input, shape index: {}]   ;;  %s3634_s17 = inlined_call_operand.vmem [shape: f32[1,32], index: 17, kind: input, shape index: {}]   ;;  %s3635_s18 = inlined_call_operand.hbm [shape: f32[2,8,32], index: 18, kind: output, shape index: {}]  }
   0x1   :  { %3646 = sst [smem:[#allocation16_spill]] %s3617_s0 }
   0x2   :  { %3647 = sst [smem:[#allocation17_spill]] %s3618_s1 }
   0x3   :  { %3648 = sst [smem:[#allocation18_spill]] %s3619_s2 }
   0x4   :  { %3649 = sst [smem:[#allocation19_spill]] %s3620_s3 }
   0x5   :  { %3650 = sst [smem:[#allocation20_spill]] %s3634_s17 }
   0x6   :  { %3651 = sst [smem:[#allocation21_spill]] %s3635_s18 }
   0x7   :  { %23 = vsyncpa [#allocation7], 0 }
   0x8   :  { %25 = vsyncpa [#allocation7 + $0x1], 0  ;;  %s3184_s27 = smov 0   ;;  %s3186_s28 = smov 0  }
   0x9   :  { %s3188_s29 = smov 0   ;;  %s3190_s30 = smov 0  }
   0xa   :  { %s3192_s0 = smov 0   ;;  %s3194_s19 = smov 0  }
   0xb LB: > { %3652 = sst [smem:[#allocation9_spill]] %s3058_s27  ;;  %s2587_s1 = sadd.s32 4294967295, %s3078_s19   ;;  %s3078_s19 = sphi %s3194_s19, %s31_s19   ;;  %s3074_s0 = sphi %s3192_s0, %s3675_s0   ;;  %s3070_s30 = sphi %s3190_s30, %s3674_s30   ;;  %s3066_s29 = sphi %s3188_s29, %s3678_s29   ;;  %s3062_s28 = sphi %s3186_s28, %s3677_s28   ;;  %s3058_s27 = sphi %s3184_s27, %s3676_s27  }
   0xc   : > { %3653 = sst [smem:[#allocation10_spill]] %s3066_s29  ;;  %s2588_s20 = sadd.s32 4294967294, %s3078_s19  }
   0xd   : > { %3654 = sst [smem:[#allocation11_spill]] %s3074_s0  ;;  %s50_s21 = sadd.s32 1, %s3074_s0 }
   0xe   : > { %3655 = sst [smem:[#allocation12_spill]] %s3078_s19  ;;  %s464_s22 = sadd.s32 1, %s3066_s29 }
   0xf   : > { %p52_p0 = scmp.ge.s32.totalorder %s50_s21, 2  ;;  %p474_p1 = scmp.ne.s32.totalorder %s3066_s29, %s3062_s28 }
  0x10   : > { %p475_p2 = scmp.eq.s32.totalorder %s2587_s1, 1  ;;  %p480_p3 = scmp.ne.s32.totalorder %s3062_s28, %s3058_s27 }
  0x11   : > { %s3680_s21 = smov (%p52_p0, %s50_s21), 0  ;;  %p481_p5 = scmp.eq.s32.totalorder %s2588_s20, 1 }
  0x12   : > { %3656 = sst [smem:[#allocation13_spill]] %s3680_s21  ;;  %p3224_p4 = por %p475_p2, %p474_p1 }
  0x13   : > { %s459_s23 = ssub.s32 %s3074_s0, %s3680_s21  ;;  %p2594_p6 = scmp.ge.s32.totalorder %s3078_s19, 1 }
  0x14   : > { %p462_p7 = scmp.eq.s32.totalorder %s459_s23, 0  ;;  %p3231_p8 = por %p481_p5, %p480_p3 }
  0x15   : > { %p577_p9 = scmp.lt.s32.totalorder %s3078_s19, 3 }
  0x16   : > { %s3658_s24 = scalar_select %p3231_p8, 1, 0 }
  0x17   : > { %s3237_s25 = scalar_select %p462_p7, %s3066_s29, %s464_s22  }
  0x18   : > { %3659 = sst [smem:[#allocation14_spill]] %s3658_s24  ;;  %p578_p10 = pnand %p2594_p6, %p577_p9 }
  0x19   : > { %3660 = sst [smem:[#allocation15_spill]] %s3237_s25  ;;  %s3645_s26 = sand.u32 (!%p578_p10), 1, %s3062_s28  }
  0x1a   : > { %581 = sbr.rel (%p578_p10) target bundleno = 4538 (0x11ba), region = 92  ;;  %p649_p11 = scmp.lt.s32.totalorder (!%p578_p10), %s3070_s30, 1 }
  0x1b   : > { %s3243_s1 = sshll.u32 (!%p578_p10), %s3645_s26, 3  ;;  %s3661_s24 = sld [smem:[#allocation16_spill]] (!%p578_p10) }
  0x1c   : > { %s3662_s29 = sld [smem:[#allocation17_spill]] (!%p578_p10)  ;;  %s648_s18 = scalar_lea.vmem (!%p578_p10), [#allocation6], %s3243_s1 }
  0x1d   : > { %s3255_s17 = smov (!%p578_p10), 0  }
  0x1f   : > { %s650_s20 = scalar_select %p649_p11, %s3070_s30, 1 }
  0x21   : > { %s2596_s23 = sshll.u32 %s650_s20, 3 }
  0x22   : > { %s652_s27 = scalar_lea.vmem %s3661_s24, %s2596_s23  ;;  %s3252_s19 = scalar_lea.vmem %s3662_s29, %s2596_s23 }
  0x23   : > { %v679_v0 = vld [vmem:[%s652_s27] sm:$0xff] }
  0x24 LB: >> { %v3084_v1 = vmov 0.0   ;;  %s2598_s0 = sshll.u32 %s3082_s17, 5  ;;  %vm3085_vm0 = vmmov 0   ;;  %vm700_vm1 = vcmask 261120   ;;  %s2603_s24 = sshll.u32 %s3082_s17, 3  ;;  %vm859_vm2 = vcmask 64512   ;;  %s3082_s17 = sphi %s3255_s17, %s685_s17  }
  0x25   : >> { %2735 = vmatprep.subr.mxu0 %v3084_v1  ;;  %2746 = vmatprep.subr.mxu1 %v3084_v1  ;;  %s687_s27 = scalar_lea.vmem %s3621_s4, %s2598_s0  ;;  %s774_s20 = scalar_lea.vmem %s3623_s6, %s2598_s0 }
  0x26   : >> { %2743 = vmatprep.mubr.msk.f32.mxu0 %vm3085_vm0, %v3084_v1  ;;  %2754 = vmatprep.mubr.msk.f32.mxu1 %vm3085_vm0, %v3084_v1  ;;  %v691_v2 = vld [vmem:[%s687_s27 + $0x18] sm:$0xff]  ;;  %v690_v4 = vld [vmem:[%s687_s27 + $0x10] sm:$0xff]  ;;  %v689_v6 = vld [vmem:[%s687_s27 + $0x8] sm:$0xff]  ;;  %s692_s0 = scalar_lea.vmem %s3622_s5, %s3082_s17  ;;  %s858_s25 = scalar_lea.vmem [#allocation2], %s2603_s24 }
  0x27   : >> { %v778_v3 = vld [vmem:[%s774_s20 + $0x18] sm:$0xff]  ;;  %2736 = vmatpush3.msra.mxu0 %v691_v2  ;;  %v777_v5 = vld [vmem:[%s774_s20 + $0x10] sm:$0xff]  ;;  %v776_v7 = vld [vmem:[%s774_s20 + $0x8] sm:$0xff] }
  0x28   : >> { %2747 = vmatpush3.msra.mxu1 %v778_v3  ;;  %2737 = vmatprep.subr.mxu0 %v3084_v1  ;;  %v688_v8 = vld [vmem:[%s687_s27] sm:$0xff]  ;;  %s779_s27 = scalar_lea.vmem %s3624_s7, %s3082_s17  ;;  %s685_s17 = sadd.s32 1, %s3082_s17  }
  0x29   : >> { %2748 = vmatprep.subr.mxu1 %v3084_v1  ;;  %2738 = vmatpush3.msra.mxu0 %v690_v4  ;;  %v775_v9 = vld [vmem:[%s774_s20] sm:$0xff]  ;;  %s861_s20 = scalar_lea.vmem [#allocation3], %s2603_s24  ;;  %p682_p12 = scmp.ge.s32.totalorder %s685_s17, 4  }
  0x2a   : >> { %2749 = vmatpush3.msra.mxu1 %v777_v5  ;;  %2739 = vmatprep.subr.mxu0 %v3084_v1  ;;  %v2599_v10 = vld [vmem:[%s692_s0] ss:$0 sm:$0xff]  ;;  %s3663_s0 = sld [smem:[#allocation18_spill]] (%p682_p12)  ;;  %v3086_v19 = vmov (%p682_p12), 0.0   ;;  %vm3087_vm3 = vmmov (%p682_p12), 0   ;;  %v2619_v63 = vld [vmem:[%s3625_s8 + $0x8] sm:$0xff] (%p682_p12) }
  0x2b   : >> { %2750 = vmatprep.subr.mxu1 %v3084_v1  ;;  %2740 = vmatpush3.msra.mxu0 %v689_v6  ;;  %v2601_v11 = vld [vmem:[%s779_s27] ss:$0 sm:$0xff]  ;;  %2201 = vst.msk [vmem:[#allocation5] sm:$0xff] (%p682_p12), %vm700_vm1, %v3086_v19  ;;  %s3665_s3 = sld [smem:[#allocation19_spill]] (%p682_p12)  ;;  %s2656_s27 = sshll.u32 (%p682_p12), %s3070_s30, 7 }
  0x2c   : >> { %2751 = vmatpush3.msra.mxu1 %v776_v7  ;;  %2741 = vmatprep.subr.mxu0 %v3084_v1  ;;  %v3306_v23 = vld [vmem:[%s3252_s19] sm:$0xff] (%p682_p12)  ;;  %s3666_s29 = sld [smem:[#allocation20_spill]] (%p682_p12)  ;;  %s2444_s17 = sshll.u32 (%p682_p12), %s648_s18, 4  ;;  %s2445_s17 = int_to_ptr.vmem [resolvable:$true] %s2444_s17 }
  0x2d   : >> { %2752 = vmatprep.subr.mxu1 %v3084_v1  ;;  %2742 = vmatpush3.msra.mxu0 %v688_v8  ;;  %v1116_v3 = vld [vmem:[%s3625_s8] sm:$0xff] (%p682_p12)  ;;  %s3668_s23 = sand.u32 (%p682_p12), 1, %s3062_s28   ;;  %s3088_s30 = smov (%p682_p12), [#allocation6]  }
  0x2e   : >> { %2753 = vmatpush3.msra.mxu1 %v775_v9  ;;  %2744 = vmatmul.mubr.msk.f32.vlgmr.msra.gmra.mxu0 %vm700_vm1, %v679_v0  ;;  %s2430_s22 = scalar_lea.sflag (%p682_p12), [#allocation7], %s3668_s23  ;;  %s3002_s19 = sshll.u32 (%p682_p12), %s3088_s30, 4  ;;  %s3003_s19 = int_to_ptr.vmem [resolvable:$false] %s3002_s19 }
  0x2f   : >> { %2755 = vmatmul.mubr.msk.f32.vlgmr.msra.gmra.mxu1 %vm700_vm1, %v679_v0  ;;  %2757 = vmatprep.subr.mxu0 (%p682_p12), %v3086_v19  ;;  %p3005_p2 = scmp.lt.s32.totalorder (%p682_p12), %s2445_s17, %s3003_s19 }
  0x30   : > { %s3664_s21 = smov (%p682_p12), %s3663_s0  ;;  %v870_v18 = vld [vmem:[%s3663_s0 + $0x18] sm:$0xff] (%p682_p12)  ;;  %2765 = vmatprep.mubr.msk.f32.mxu0 (%p682_p12), %vm3087_vm3, %v3086_v19  ;;  %2773 = vmatprep.subr.mxu1 (%p682_p12), %v3086_v19  ;;  %s3004_s0 = scalar_lea.vmem (%p682_p12), %s3003_s19, 256 }
  0x31   : > { %v869_v20 = vld [vmem:[%s3664_s21 + $0x10] sm:$0xff] (%p682_p12)  ;;  %2758 = vmatpush3.msra.mxu0 (%p682_p12), %v870_v18  ;;  %v868_v21 = vld [vmem:[%s3664_s21 + $0x8] sm:$0xff] (%p682_p12)  ;;  %2775 = vmatprep.mubr.msk.f32.mxu1 (%p682_p12), %vm3087_vm3, %v3086_v19  ;;  %v867_v22 = vld [vmem:[%s3664_s21] sm:$0xff] (%p682_p12) }
  0x32   : > { %2759 = vmatprep.subr.mxu0 (%p682_p12), %v3086_v19  ;;  %v2604_v25 = vld [vmem:[%s3665_s3] ss:$0 sm:$0xff] (%p682_p12)  ;;  %v2612_v30 = vld [vmem:[%s3664_s21 + $0x38] sm:$0xff] (%p682_p12)  ;;  %v2611_v31 = vld [vmem:[%s3664_s21 + $0x30] sm:$0xff] (%p682_p12) }
  0x33   : > { %2760 = vmatpush3.msra.mxu0 (%p682_p12), %v869_v20  ;;  %v2610_v32 = vld [vmem:[%s3664_s21 + $0x28] sm:$0xff] (%p682_p12)  ;;  %v2609_v33 = vld [vmem:[%s3664_s21 + $0x20] sm:$0xff] (%p682_p12)  ;;  %v2625_v4 = vld [vmem:[%s3664_s21 + $0x58] sm:$0xff] (%p682_p12) }
  0x34   : > { %2761 = vmatprep.subr.mxu0 (%p682_p12), %v3086_v19  ;;  %v2614_v46 = vld [vmem:[%s3665_s3 + $0x1] ss:$0 sm:$0xff] (%p682_p12)  ;;  %v2624_v6 = vld [vmem:[%s3664_s21 + $0x50] sm:$0xff] (%p682_p12)  ;;  %v2623_v8 = vld [vmem:[%s3664_s21 + $0x48] sm:$0xff] (%p682_p12) }
  0x35   : > { %2762 = vmatpush3.msra.mxu0 (%p682_p12), %v868_v21 }
  0x36   : > { %2763 = vmatprep.subr.mxu0 (%p682_p12), %v3086_v19 }
  0x37   : > { %2764 = vmatpush3.msra.mxu0 (%p682_p12), %v867_v22 }
  0x38   : > { %2766 = vmatmul.mubr.msk.f32.vlgmr.msra.gmra.mxu0 (%p682_p12), %vm700_vm1, %v3306_v23  ;;  %2768 = vmatprep.subr.mxu0 (%p682_p12), %v3086_v19 }
  0x39   : > { %2770 = vmatprep.mubr.msk.f32.mxu0 (%p682_p12), %vm3087_vm3, %v3086_v19 }
  0xee   : >> { %v770_v12 = vpop.f32.mrf.mxu0  ;;  %684 = sbr.rel (!%p682_p12) target bundleno = 36 (0x24), region = 179 }
  0xef   : >> { %v853_v13 = vpop.f32.mrf.mxu1  ;;  %v771_v14 = vadd.f32 %v2599_v10, %v770_v12  ;;  %v2622_v10 = vld [vmem:[%s3664_s21 + $0x40] sm:$0xff] (%p682_p12) }
  0xf0   : >> { %v854_v15 = vadd.f32 %v2601_v11, %v853_v13  ;;  %v2745_v16 = vpop.f32.mrf.mxu0 }
  0xf1   : >> { %v2756_v17 = vpop.f32.mrf.mxu1  ;;  %860 = vst.msk [vmem:[%s858_s25] sm:$0xff] %vm859_vm2, %v771_v14 }
  0xf2   : >> { %862 = vst.msk [vmem:[%s861_s20] sm:$0xff] %vm859_vm2, %v854_v15  ;;  %v2627_v15 = vld [vmem:[%s3665_s3 + $0x2] ss:$0 sm:$0xff] (%p682_p12)  ;;  %s3667_s20 = sld [smem:[#allocation21_spill]] (%p682_p12) }
  0xf8   : > { %v953_v24 = vld [vmem:[#allocation2] sm:$0xff]  ;;  %v948_v26 = vpop.f32.mrf.mxu0  ;;  %v1202_v50 = vld [vmem:[#allocation2 + $0x8] sm:$0xff]  ;;  %v1598_v12 = vld [vmem:[#allocation2 + $0x10] sm:$0xff]  ;;  %s2442_s26 = scalar_lea.hbm %s3667_s20, %s2656_s27 }
  0xf9   : > { %2769 = vmatpush3.xpose.msk.msra.mxu0 %vm859_vm2, %v953_v24  ;;  %v949_v27 = vadd.f32 %v2604_v25, %v948_v26  ;;  %v1042_v43 = vld [vmem:[#allocation3] sm:$0xff]  ;;  %v1291_v62 = vld [vmem:[#allocation3 + $0x8] sm:$0xff] }
  0xfa   : > { %2778 = vmatprep.subr.mxu0 %v3086_v19  ;;  %v2767_v28 = vpop.f32.mrf.mxu0  ;;  %2774 = vmatpush3.msra.mxu1 %v1042_v43 }
  0xfb   : > { %v952_v29 = vmul.f32 0.35355338, %v949_v27  ;;  %2789 = vmatprep.subr.mxu1 %v3086_v19 }
  0xfd   : > { %2771 = vmatmul.mubr.msk.f32.vlgmr.msra.gmra.mxu0 %vm859_vm2, %v952_v29 }
  0xfe   : > { %2786 = vmatprep.mubr.msk.f32.mxu0 %vm3087_vm3, %v3086_v19  ;;  %2779 = vmatpush3.msra.mxu0 %v2612_v30  ;;  %v1687_v30 = vld [vmem:[#allocation3 + $0x10] sm:$0xff] }
  0xff   : > { %2780 = vmatprep.subr.mxu0 %v3086_v19 }
 0x100   : > { %2781 = vmatpush3.msra.mxu0 %v2611_v31  ;;  %v2632_v31 = vld [vmem:[%s3625_s8 + $0x10] sm:$0xff] }
 0x101   : > { %2782 = vmatprep.subr.mxu0 %v3086_v19 }
 0x102   : > { %2783 = vmatpush3.msra.mxu0 %v2610_v32 }
 0x103   : > { %2784 = vmatprep.subr.mxu0 %v3086_v19 }
 0x104   : > { %2785 = vmatpush3.msra.mxu0 %v2609_v33 }
 0x105   : > { %2787 = vmatmul.mubr.msk.f32.vlgmr.msra.gmra.mxu0 %vm700_vm1, %v3306_v23  ;;  %2799 = vmatprep.subr.mxu0 %v3086_v19 }
 0x106   : > { %2801 = vmatprep.mubr.msk.f32.mxu0 %vm3087_vm3, %v3086_v19  ;;  %2800 = vmatpush3.msra.mxu0 %v2619_v63 }
 0x107   : > { %2809 = vmatprep.subr.mxu0 %v3086_v19 }
 0x1bd   : > { %v1027_v34 = vpop.f32.mrf.mxu0 }
 0x1be   : > { %v1031_v35 = vsel %vm859_vm2, %v1027_v34, -inf }
 0x1bf   : > { %1032 = vmax.xlane.f32.xlu0 %v1031_v35  ;;  %v2772_v36 = vpop.f32.mrf.mxu0  ;;  %v2637_v35 = vld [vmem:[%s3664_s21 + $0x78] sm:$0xff] }
 0x1c5   : > { %v1196_v42 = vpop.f32.mrf.mxu0 }
 0x1c6   : > { %v1197_v47 = vadd.f32 %v2614_v46, %v1196_v42  ;;  %v2639_v46 = vld [vmem:[%s3665_s3 + $0x3] ss:$0 sm:$0xff]  ;;  %s2998_s3 = scalar_lea.vmem %s2445_s17, 128 }
 0x1c7   : > { %v2788_v44 = vpop.f32.mrf.mxu0  ;;  %p2999_p13 = scmp.ne.s32.totalorder %s2445_s17, %s2998_s3  ;;  %p3006_p3 = scmp.lt.s32.totalorder %s3004_s0, %s2998_s3 }
 0x1c8   : > { %v1200_v51 = vmul.f32 0.35355338, %v1197_v47 }
 0x1c9   : > { %p3000_p0 = pnand %p2999_p13, %p3224_p4  ;;  %p3007_p5 = por %p3006_p3, %p3005_p2 }
 0x1cb   : > { %p3001_p1 = pneg %p3000_p0 }
 0x1cd   : > { %p3008_p6 = pnand %p3007_p5, %p3001_p1 }
 0x248   : > { %v1033_v37 = vpop.xlane.xlu0 %1032 }
 0x249   : > { %v1034_v38 = vsub.f32 %v1027_v34, %v1033_v37  ;;  %v2636_v37 = vld [vmem:[%s3664_s21 + $0x70] sm:$0xff] }
 0x24b   : > { %v1035_v39 = vmul.f32 1.442695, %v1034_v38 }
 0x24d   : > { %2974 = vpow2.f32 %v1035_v39  ;;  %v2635_v39 = vld [vmem:[%s3664_s21 + $0x68] sm:$0xff] }
 0x25a   : > { %v2975_v40 = vpop.eup %2974 }
 0x25b   : > { %v1037_v41 = vsel %vm859_vm2, %v2975_v40, 0.0 }
 0x25c   : > { %1038 = vadd.xlane.f32.xlu0 %v1037_v41  ;;  %v1922_v41 = vld [vmem:[#allocation2 + $0x18] sm:$0xff] }
 0x2e5   : > { %v1039_v45 = vpop.xlane.xlu0 %1038 }
 0x2e6   : > { %2976 = vrcp.f32 %v1039_v45 }
 0x2f3   : > { %v2977_v48 = vpop.eup %2976 }
 0x2f4   : > { %v1041_v49 = vmul.f32 %v2977_v48, %v2975_v40  ;;  %v2634_v40 = vld [vmem:[%s3664_s21 + $0x60] sm:$0xff] }
 0x2f6   : > { %2776 = vmatmul.mubr.msk.f32.vlgmr.msra.gmra.mxu1 %vm859_vm2, %v1041_v49 }
 0x2f7   : > { %2790 = vmatpush3.xpose.msk.msra.mxu1 %vm859_vm2, %v1202_v50  ;;  %2791 = vmatprep.mubr.msk.f32.mxu1 %vm3087_vm3, %v3086_v19 }
 0x2f8   : > { %2794 = vmatprep.subr.mxu1 %v3086_v19 }
 0x2fa   : > { %2792 = vmatmul.mubr.msk.f32.vlgmr.msra.gmra.mxu1 %vm859_vm2, %v1200_v51 }
 0x2fb   : > { %2796 = vmatprep.mubr.msk.f32.mxu1 %vm3087_vm3, %v3086_v19  ;;  %2795 = vmatpush3.msra.mxu1 %v1291_v62 }
 0x2fc   : > { %2804 = vmatprep.subr.mxu1 %v3086_v19 }
 0x3b6   : > { %v1112_v52 = vpop.f32.mrf.mxu1 }
 0x3b8   : > { %v2777_v53 = vpop.f32.mrf.mxu1 }
 0x3ba   : > { %v1275_v54 = vpop.f32.mrf.mxu1 }
 0x3bb   : > { %v1279_v55 = vsel %vm859_vm2, %v1275_v54, -inf }
 0x3bc   : > { %1280 = vmax.xlane.f32.xlu1 %v1279_v55  ;;  %v2793_v56 = vpop.f32.mrf.mxu1 }
 0x445   : > { %v1281_v57 = vpop.xlane.xlu1 %1280 }
 0x446   : > { %v1282_v58 = vsub.f32 %v1275_v54, %v1281_v57 }
 0x448   : > { %v1283_v59 = vmul.f32 1.442695, %v1282_v58 }
 0x44a   : > { %2978 = vpow2.f32 %v1283_v59  ;;  %v2011_v59 = vld [vmem:[#allocation3 + $0x18] sm:$0xff] }
 0x457   : > { %v2979_v60 = vpop.eup %2978 }
 0x458   : > { %v1285_v61 = vsel %vm859_vm2, %v2979_v60, 0.0 }
 0x459   : > { %1286 = vadd.xlane.f32.xlu1 %v1285_v61 }
 0x4e2   : > { %v1287_v0 = vpop.xlane.xlu1 %1286 }
 0x4e3   : > { %2980 = vrcp.f32 %v1287_v0 }
 0x4f0   : > { %v2981_v1 = vpop.eup %2980 }
 0x4f1   : > { %v1289_v2 = vmul.f32 %v2981_v1, %v2979_v60  ;;  %v2644_v60 = vld [vmem:[%s3625_s8 + $0x18] sm:$0xff] }
 0x4f3   : > { %2797 = vmatmul.mubr.msk.f32.vlgmr.msra.gmra.mxu1 %vm859_vm2, %v1289_v2 }
 0x4f4   : > { %2805 = vmatpush3.msra.mxu1 %v1116_v3  ;;  %2806 = vmatprep.mubr.msk.f32.mxu1 %vm3087_vm3, %v3086_v19  ;;  %v2646_v3 = vld [vmem:[%s3626_s9] ss:$0 sm:$0xff] }
 0x4f5   : > { %2820 = vmatprep.subr.mxu1 %v3086_v19 }
 0x4f7   : > { %2807 = vmatmul.mubr.msk.f32.vlgmr.msra.gmra.mxu1 %vm859_vm2, %v1112_v52 }
 0x4f8   : > { %2822 = vmatprep.mubr.msk.f32.mxu1 %vm3087_vm3, %v3086_v19  ;;  %2821 = vmatpush3.xpose.msk.msra.mxu1 %vm859_vm2, %v1598_v12 }
 0x4f9   : > { %2825 = vmatprep.subr.mxu1 %v3086_v19 }
 0x5b3   : > { %v1361_v5 = vpop.f32.mrf.mxu1 }
 0x5b4   : > { %2802 = vmatmul.mubr.msk.f32.vlgmr.msra.gmra.mxu0 %vm859_vm2, %v1361_v5 }
 0x5b5   : > { %2810 = vmatpush3.msra.mxu0 %v2625_v4  ;;  %v2798_v7 = vpop.f32.mrf.mxu1  ;;  %2817 = vmatprep.mubr.msk.f32.mxu0 %vm3087_vm3, %v3086_v19 }
 0x5b6   : > { %2811 = vmatprep.subr.mxu0 %v3086_v19 }
 0x5b7   : > { %2812 = vmatpush3.msra.mxu0 %v2624_v6  ;;  %v3386_v9 = vpop.f32.mrf.mxu1 }
 0x5b8   : > { %2813 = vmatprep.subr.mxu0 %v3086_v19 }
 0x5b9   : > { %2814 = vmatpush3.msra.mxu0 %v2623_v8  ;;  %v2808_v11 = vpop.f32.mrf.mxu1 }
 0x5ba   : > { %2815 = vmatprep.subr.mxu0 %v3086_v19 }
 0x5bb   : > { %2816 = vmatpush3.msra.mxu0 %v2622_v10 }
 0x5bc   : > { %2818 = vmatmul.mubr.msk.f32.vlgmr.msra.gmra.mxu0 %vm700_vm1, %v3306_v23  ;;  %2830 = vmatprep.subr.mxu0 %v3086_v19 }
 0x5bd   : > { %2832 = vmatprep.mubr.msk.f32.mxu0 %vm3087_vm3, %v3086_v19  ;;  %2831 = vmatpush3.msra.mxu0 %v2632_v31  ;;  %v2309_v31 = vld [vmem:[%s3631_s14 + $0x68] sm:$0xff] }
 0x5be   : > { %2835 = vmatprep.subr.mxu0 %v3086_v19 }
 0x674   : > { %v1436_v13 = vpop.f32.mrf.mxu0 }
 0x675   : > { %v1510_v42 = vadd.f32 %v3386_v9, %v1436_v13 }
 0x676   : > { %v2803_v14 = vpop.f32.mrf.mxu0 }
 0x677   : > { %v2206_v14 = vld [vmem:[%s3629_s12 + $0x18] sm:$0xff] }
 0x67c   : > { %v1592_v16 = vpop.f32.mrf.mxu0 }
 0x67d   : > { %v1593_v17 = vadd.f32 %v2627_v15, %v1592_v16  ;;  %v2205_v15 = vld [vmem:[%s3629_s12 + $0x10] sm:$0xff]  ;;  %v2203_v16 = vld [vmem:[%s3629_s12] sm:$0xff] }
 0x67e   : > { %v2819_v18 = vpop.f32.mrf.mxu0 }
 0x67f   : > { %v1596_v20 = vmul.f32 0.35355338, %v1593_v17 }
 0x681   : > { %2823 = vmatmul.mubr.msk.f32.vlgmr.msra.gmra.mxu1 %vm859_vm2, %v1596_v20 }
 0x682   : > { %2827 = vmatprep.mubr.msk.f32.mxu1 %vm3087_vm3, %v3086_v19  ;;  %2826 = vmatpush3.msra.mxu1 %v1687_v30  ;;  %v2310_v30 = vld [vmem:[%s3631_s14 + $0x70] sm:$0xff] }
 0x683   : > { %2856 = vmatprep.subr.mxu1 %v3086_v19 }
 0x741   : > { %v1671_v21 = vpop.f32.mrf.mxu1 }
 0x742   : > { %v1675_v22 = vsel %vm859_vm2, %v1671_v21, -inf }
 0x743   : > { %1676 = vmax.xlane.f32.xlu0 %v1675_v22  ;;  %v2824_v24 = vpop.f32.mrf.mxu1  ;;  %v2647_v22 = vld [vmem:[%s3627_s10] ss:$0 sm:$0xff] }
 0x7cc   : > { %v1677_v25 = vpop.xlane.xlu0 %1676 }
 0x7cd   : > { %v1678_v26 = vsub.f32 %v1671_v21, %v1677_v25  ;;  %v2648_v25 = vld [vmem:[%s3628_s11] ss:$0 sm:$0xff] }
 0x7cf   : > { %v1679_v27 = vmul.f32 1.442695, %v1678_v26 }
 0x7d1   : > { %2982 = vpow2.f32 %v1679_v27 }
 0x7de   : > { %v2983_v28 = vpop.eup %2982 }
 0x7df   : > { %v1681_v29 = vsel %vm859_vm2, %v2983_v28, 0.0 }
 0x7e0   : > { %1682 = vadd.xlane.f32.xlu1 %v1681_v29  ;;  %v2311_v29 = vld [vmem:[%s3631_s14 + $0x78] sm:$0xff] }
 0x869   : > { %v1683_v32 = vpop.xlane.xlu1 %1682 }
 0x86a   : > { %2984 = vrcp.f32 %v1683_v32  ;;  %v2308_v32 = vld [vmem:[%s3631_s14 + $0x60] sm:$0xff] }
 0x877   : > { %v2985_v33 = vpop.eup %2984 }
 0x878   : > { %v1685_v34 = vmul.f32 %v2985_v33, %v2983_v28  ;;  %v2307_v33 = vld [vmem:[%s3631_s14 + $0x58] sm:$0xff] }
 0x87a   : > { %2828 = vmatmul.mubr.msk.f32.vlgmr.msra.gmra.mxu1 %vm859_vm2, %v1685_v34  ;;  %v2306_v34 = vld [vmem:[%s3631_s14 + $0x50] sm:$0xff] }
 0x87b   : > { %2858 = vmatprep.mubr.msk.f32.mxu1 %vm3087_vm3, %v3086_v19  ;;  %2857 = vmatpush3.msra.mxu1 %v2644_v60 }
 0x87c   : > { %2872 = vmatprep.subr.mxu1 %v3086_v19 }
 0x93a   : > { %v1757_v36 = vpop.f32.mrf.mxu1 }
 0x93b   : > { %2833 = vmatmul.mubr.msk.f32.vlgmr.msra.gmra.mxu0 %vm859_vm2, %v1757_v36  ;;  %v2304_v36 = vld [vmem:[%s3631_s14 + $0x40] sm:$0xff] }
 0x93c   : > { %2836 = vmatpush3.msra.mxu0 %v2637_v35  ;;  %v2829_v38 = vpop.f32.mrf.mxu1  ;;  %2843 = vmatprep.mubr.msk.f32.mxu0 %vm3087_vm3, %v3086_v19  ;;  %v2305_v35 = vld [vmem:[%s3631_s14 + $0x48] sm:$0xff] }
 0x93d   : > { %2837 = vmatprep.subr.mxu0 %v3086_v19  ;;  %v2302_v38 = vld [vmem:[%s3631_s14 + $0x30] sm:$0xff] }
 0x93e   : > { %2838 = vmatpush3.msra.mxu0 %v2636_v37  ;;  %v2303_v37 = vld [vmem:[%s3631_s14 + $0x38] sm:$0xff] }
 0x93f   : > { %2839 = vmatprep.subr.mxu0 %v3086_v19 }
 0x940   : > { %2840 = vmatpush3.msra.mxu0 %v2635_v39  ;;  %v2301_v39 = vld [vmem:[%s3631_s14 + $0x28] sm:$0xff] }
 0x941   : > { %2841 = vmatprep.subr.mxu0 %v3086_v19 }
 0x942   : > { %2842 = vmatpush3.msra.mxu0 %v2634_v40  ;;  %v2300_v40 = vld [vmem:[%s3631_s14 + $0x20] sm:$0xff] }
 0x943   : > { %2844 = vmatmul.mubr.msk.f32.vlgmr.msra.gmra.mxu0 %vm700_vm1, %v3306_v23  ;;  %2846 = vmatprep.subr.mxu0 %v3086_v19 }
 0x944   : > { %2848 = vmatprep.mubr.msk.f32.mxu0 %vm3087_vm3, %v3086_v19  ;;  %2847 = vmatpush3.xpose.msk.msra.mxu0 %vm859_vm2, %v1922_v41  ;;  %v2299_v41 = vld [vmem:[%s3631_s14 + $0x18] sm:$0xff] }
 0x945   : > { %2851 = vmatprep.subr.mxu0 %v3086_v19 }
 0x9fb   : > { %v1832_v43 = vpop.f32.mrf.mxu0 }
 0x9fc   : > { %v1836_v44 = vadd.f32 %v1832_v43, %v1510_v42  ;;  %v2298_v42 = vld [vmem:[%s3631_s14 + $0x10] sm:$0xff]  ;;  %v2297_v43 = vld [vmem:[%s3631_s14 + $0x8] sm:$0xff] }
 0x9fd   : > { %v2834_v45 = vpop.f32.mrf.mxu0 }
 0x9fe   : > { %v2649_v45 = vld [vmem:[%s3630_s13] ss:$0 sm:$0xff] }
 0xa03   : > { %v1916_v47 = vpop.f32.mrf.mxu0 }
 0xa04   : > { %v1917_v48 = vadd.f32 %v2639_v46, %v1916_v47 }
 0xa05   : > { %v2845_v49 = vpop.f32.mrf.mxu0 }
 0xa06   : > { %v1920_v50 = vmul.f32 0.35355338, %v1917_v48 }
 0xa08   : > { %2849 = vmatmul.mubr.msk.f32.vlgmr.msra.gmra.mxu0 %vm859_vm2, %v1920_v50 }
 0xa09   : > { %2853 = vmatprep.mubr.msk.f32.mxu0 %vm3087_vm3, %v3086_v19  ;;  %2852 = vmatpush3.msra.mxu0 %v2011_v59 }
 0xa0a   : > { %2861 = vmatprep.subr.mxu0 %v3086_v19 }
 0xac8   : > { %v1995_v51 = vpop.f32.mrf.mxu0 }
 0xac9   : > { %v1999_v52 = vsel %vm859_vm2, %v1995_v51, -inf }
 0xaca   : > { %2000 = vmax.xlane.f32.xlu0 %v1999_v52  ;;  %v2850_v53 = vpop.f32.mrf.mxu0 }
 0xb53   : > { %v2001_v54 = vpop.xlane.xlu0 %2000 }
 0xb54   : > { %v2002_v55 = vsub.f32 %v1995_v51, %v2001_v54 }
 0xb56   : > { %v2003_v56 = vmul.f32 1.442695, %v2002_v55 }
 0xb58   : > { %2986 = vpow2.f32 %v2003_v56 }
 0xb65   : > { %v2987_v57 = vpop.eup %2986 }
 0xb66   : > { %v2005_v58 = vsel %vm859_vm2, %v2987_v57, 0.0 }
 0xb67   : > { %2006 = vadd.xlane.f32.xlu1 %v2005_v58 }
 0xbf0   : > { %v2007_v61 = vpop.xlane.xlu1 %2006 }
 0xbf1   : > { %2988 = vrcp.f32 %v2007_v61 }
 0xbfe   : > { %v2989_v62 = vpop.eup %2988 }
 0xbff   : > { %v2009_v63 = vmul.f32 %v2989_v62, %v2987_v57  ;;  %v2652_v57 = vld [vmem:[%s3632_s15] ss:$0 sm:$0xff] }
 0xc01   : > { %2854 = vmatmul.mubr.msk.f32.vlgmr.msra.gmra.mxu0 %vm859_vm2, %v2009_v63 }
 0xc02   : > { %2869 = vmatprep.mubr.msk.f32.mxu0 %vm3087_vm3, %v3086_v19  ;;  %2862 = vmatpush3.msra.mxu0 %v2206_v14 }
 0xc03   : > { %2863 = vmatprep.subr.mxu0 %v3086_v19 }
 0xc04   : > { %2864 = vmatpush3.msra.mxu0 %v2205_v15 }
 0xc05   : > { %2865 = vmatprep.subr.mxu0 %v3086_v19 }
 0xcc1   : > { %v2081_v0 = vpop.f32.mrf.mxu0 }
 0xcc2   : > { %2859 = vmatmul.mubr.msk.f32.vlgmr.msra.gmra.mxu1 %vm859_vm2, %v2081_v0 }
 0xcc3   : > { %v2855_v1 = vpop.f32.mrf.mxu0  ;;  %2904 = vmatprep.mubr.msk.f32.mxu1 %vm3087_vm3, %v3086_v19  ;;  %2873 = vmatpush3.msra.mxu1 %v2311_v29 }
 0xcc4   : > { %2874 = vmatprep.subr.mxu1 %v3086_v19 }
 0xcc5   : > { %2875 = vmatpush3.msra.mxu1 %v2310_v30 }
 0xcc6   : > { %2876 = vmatprep.subr.mxu1 %v3086_v19 }
 0xcc7   : > { %2877 = vmatpush3.msra.mxu1 %v2309_v31 }
 0xcc8   : > { %2878 = vmatprep.subr.mxu1 %v3086_v19 }
 0xcc9   : > { %2879 = vmatpush3.msra.mxu1 %v2308_v32 }
 0xcca   : > { %2880 = vmatprep.subr.mxu1 %v3086_v19 }
 0xccb   : > { %2881 = vmatpush3.msra.mxu1 %v2307_v33 }
 0xccc   : > { %2882 = vmatprep.subr.mxu1 %v3086_v19 }
 0xccd   : > { %2883 = vmatpush3.msra.mxu1 %v2306_v34 }
 0xcce   : > { %2884 = vmatprep.subr.mxu1 %v3086_v19 }
 0xccf   : > { %2885 = vmatpush3.msra.mxu1 %v2305_v35 }
 0xcd0   : > { %2886 = vmatprep.subr.mxu1 %v3086_v19 }
 0xcd1   : > { %2887 = vmatpush3.msra.mxu1 %v2304_v36 }
 0xcd2   : > { %2888 = vmatprep.subr.mxu1 %v3086_v19 }
 0xcd3   : > { %2889 = vmatpush3.msra.mxu1 %v2303_v37 }
 0xcd4   : > { %2890 = vmatprep.subr.mxu1 %v3086_v19 }
 0xcd5   : > { %2891 = vmatpush3.msra.mxu1 %v2302_v38 }
 0xcd6   : > { %2892 = vmatprep.subr.mxu1 %v3086_v19 }
 0xcd7   : > { %2893 = vmatpush3.msra.mxu1 %v2301_v39 }
 0xcd8   : > { %2894 = vmatprep.subr.mxu1 %v3086_v19 }
 0xcd9   : > { %2895 = vmatpush3.msra.mxu1 %v2300_v40 }
 0xcda   : > { %2896 = vmatprep.subr.mxu1 %v3086_v19 }
 0xcdb   : > { %2897 = vmatpush3.msra.mxu1 %v2299_v41 }
 0xcdc   : > { %2898 = vmatprep.subr.mxu1 %v3086_v19 }
 0xcdd   : > { %2899 = vmatpush3.msra.mxu1 %v2298_v42 }
 0xcde   : > { %2900 = vmatprep.subr.mxu1 %v3086_v19 }
 0xcdf   : > { %2901 = vmatpush3.msra.mxu1 %v2297_v43 }
 0xce0   : > { %2902 = vmatprep.subr.mxu1 %v3086_v19 }
 0xd82   : > { %v2156_v2 = vpop.f32.mrf.mxu1 }
 0xd83   : > { %v2160_v4 = vadd.f32 %v2156_v2, %v1836_v44  ;;  %v2296_v44 = vld [vmem:[%s3631_s14] sm:$0xff] }
 0xd84   : > { %v2860_v5 = vpop.f32.mrf.mxu1  ;;  %2903 = vmatpush3.msra.mxu1 %v2296_v44 }
 0xd85   : > { %v2168_v6 = vadd.f32 %v2646_v3, %v2160_v4 }
 0xd87   : > { %v2169_v7 = vadd.f32 %v2168_v6, %v3306_v23  ;;  %v2204_v23 = vld [vmem:[%s3629_s12 + $0x8] sm:$0xff] }
 0xd88   : > { %2866 = vmatpush3.msra.mxu0 %v2204_v23 }
 0xd89   : > { %v2172_v8 = vsel %vm700_vm1, %v2169_v7, 0.0  ;;  %2867 = vmatprep.subr.mxu0 %v3086_v19  ;;  %v2295_v19 = vld [vmem:[#allocation5] sm:$0xff] }
 0xd8a   : > { %2173 = vadd.xlane.f32.xlu0 %v2172_v8  ;;  %2868 = vmatpush3.msra.mxu0 %v2203_v16 }
 0xe13   : > { %v2174_v9 = vpop.xlane.xlu0 %2173 }
 0xe14   : > { %v2176_v10 = vmul.f32 0.03125, %v2174_v9  ;;  %v2654_v9 = vld [vmem:[%s3666_s29] ss:$0 sm:$0xff] }
 0xe16   : > { %v2177_v11 = vsub.f32 %v2169_v7, %v2176_v10  ;;  %v2653_v7 = vld [vmem:[%s3633_s16] ss:$0 sm:$0xff] }
 0xe18   : > { %v2178_v12 = vmul.f32 %v2177_v11, %v2177_v11 }
 0xe1a   : > { %v2179_v13 = vsel %vm700_vm1, %v2178_v12, 0.0 }
 0xe1b   : > { %2180 = vadd.xlane.f32.xlu1 %v2179_v13 }
 0xea4   : > { %v2181_v17 = vpop.xlane.xlu1 %2180 }
 0xea5   : > { %v2182_v18 = vmul.f32 0.03125, %v2181_v17 }
 0xea7   : > { %v2183_v20 = vadd.f32 1e-05, %v2182_v18 }
 0xea9   : > { %2990 = vrsqrt.f32 %v2183_v20 }
 0xeb6   : > { %v2991_v21 = vpop.eup %2990 }
 0xeb7   : > { %v2185_v24 = vmul.f32 %v2991_v21, %v2177_v11 }
 0xeb9   : > { %v2192_v26 = vmul.f32 %v2647_v22, %v2185_v24 }
 0xebb   : > { %v2199_v27 = vadd.f32 %v2648_v25, %v2192_v26 }
 0xebd   : > { %2200 = vst.msk [vmem:[#allocation4] sm:$0xff] %vm700_vm1, %v2199_v27 }
 0xec4   : > { %v3489_v28 = vld [vmem:[#allocation4] sm:$0xff] }
 0xec5   : > { %2870 = vmatmul.mubr.msk.f32.vlgmr.msra.gmra.mxu0 %vm700_vm1, %v3489_v28 }
 0xf85   : > { %v2284_v46 = vpop.f32.mrf.mxu0 }
 0xf86   : > { %v2285_v47 = vadd.f32 %v2649_v45, %v2284_v46 }
 0xf87   : > { %v2871_v48 = vpop.f32.mrf.mxu0 }
 0xf88   : > { %v2651_v49 = vmul.f32 -1.442695, %v2285_v47 }
 0xf8a   : > { %2992 = vpow2.f32 %v2651_v49 }
 0xf97   : > { %v2993_v50 = vpop.eup %2992 }
 0xf98   : > { %v2291_v51 = vadd.f32 1.0, %v2993_v50 }
 0xf9a   : > { %2994 = vrcp.f32 %v2291_v51 }
 0xfa7   : > { %v2995_v52 = vpop.eup %2994 }
 0xfa8   : > { %v2294_v53 = vmul.f32 %v2995_v52, %v2285_v47 }
 0xfaa   : > { %2905 = vmatmul.mubr.f32.vlgmr.msra.gmra.mxu1 %v2294_v53 }
0x106a   : > { %v2378_v54 = vpop.f32.mrf.mxu1 }
0x106b   : > { %v2382_v55 = vadd.f32 %v2378_v54, %v2295_v19 }
0x106c   : > { %v2906_v56 = vpop.f32.mrf.mxu1 }
0x106d   : > { %2383 = vst.msk [vmem:[#allocation5] sm:$0xff] %vm700_vm1, %v2382_v55 }
0x1074   : > { %v2387_v58 = vld [vmem:[#allocation5] sm:$0xff] }
0x1075   : > { %v2395_v59 = vadd.f32 %v2652_v57, %v2387_v58 }
0x1077   : > { %v2397_v60 = vadd.f32 %v2395_v59, %v3489_v28 }
0x1079   : > { %v2400_v61 = vsel %vm700_vm1, %v2397_v60, 0.0 }
0x107a   : > { %2401 = vadd.xlane.f32.xlu0 %v2400_v61 }
0x1103   : > { %v2402_v62 = vpop.xlane.xlu0 %2401 }
0x1104   : > { %v2404_v63 = vmul.f32 0.03125, %v2402_v62 }
0x1106   : > { %v2405_v0 = vsub.f32 %v2397_v60, %v2404_v63 }
0x1108   : > { %v2406_v1 = vmul.f32 %v2405_v0, %v2405_v0 }
0x110a   : > { %v2407_v2 = vsel %vm700_vm1, %v2406_v1, 0.0 }
0x110b   : > { %2408 = vadd.xlane.f32.xlu1 %v2407_v2 }
0x1194   : > { %v2409_v3 = vpop.xlane.xlu1 %2408 }
0x1195   : > { %v2410_v4 = vmul.f32 0.03125, %v2409_v3 }
0x1197   : > { %v2411_v5 = vadd.f32 1e-05, %v2410_v4 }
0x1199   : > { %2996 = vrsqrt.f32 %v2411_v5 }
0x11a6   : > { %v2997_v6 = vpop.eup %2996 }
0x11a7   : > { %v2413_v8 = vmul.f32 %v2997_v6, %v2405_v0 }
0x11a9   : > { %v2420_v10 = vmul.f32 %v2653_v7, %v2413_v8 }
0x11ab   : > { %v2427_v11 = vadd.f32 %v2654_v9, %v2420_v10 }
0x11ad   : > { %2428 = vst.msk [vmem:[%s648_s18] sm:$0xff] %vm700_vm1, %v2427_v11 }
0x11ae   : > { %3011 = shalt.err (!%p3008_p6)
}
0x11af   : > { %s3012_s29 = scalar_lea.hbm %s2442_s26, 128  ;;  %s3016_s27 = scalar_lea.hbm %s3667_s20, 256 }
0x11b0   : > { %p3013_p7 = scmp.ne.s32.totalorder %s2442_s26, %s3012_s29  ;;  %p3017_p11 = scmp.lt.s32.totalorder %s2442_s26, %s3667_s20 }
0x11b1   : > { %p3018_p12 = scmp.lt.s32.totalorder %s3016_s27, %s3012_s29 }
0x11b2   : > { %p3014_p9 = pnand %p3013_p7, %p3224_p4 }
0x11b3   : > { %p3019_p13 = por %p3018_p12, %p3017_p11 }
0x11b4   : > { %p3015_p10 = pneg %p3014_p9 }
0x11b6   : > { %p3020_p0 = pnand %p3019_p13, %p3015_p10 }
0x11b8   : > { %3023 = shalt.err (!%p3020_p0)
}
0x11b9   : > { %2907 = dma.vmem_to_hbm [thread:$0]  (%p3224_p4), %s2445_s17, 128, %s2442_s26, %s2430_s22  }
0x11ba PF: > { %s3669_s3 = sld [smem:[#allocation12_spill]] }
0x11bb   : > { %s3670_s23 = sld [smem:[#allocation9_spill]] }
0x11c0   : > { %p2913_p1 = scmp.ge.s32.totalorder %s3669_s3, 2 }
0x11c1   : > { %s2456_s19 = sand.u32 1, %s3670_s23  }
0x11c2   : > { %p2910_p2 = pnand %p2913_p1, %p3231_p8  ;;  %s2457_s0 = scalar_lea.sflag [#allocation7], %s2456_s19 }
0x11c4   : > { %p2911_p3 = pneg %p2910_p2 }
0x11c6   : > { %3053 = dma.done.wait (%p2911_p3), %s2457_s0, 128  }
0x11c7   : > { %3055 = vsyncadd (%p2911_p3), %s2457_s0, 4294967168  ;;  %s31_s19 = sadd.s32 1, %s3669_s3   ;;  %s3672_s29 = sld [smem:[#allocation10_spill]] }
0x11c8   : > { %p28_p5 = scmp.ge.s32.totalorder %s31_s19, 4   ;;  %s3673_s18 = sld [smem:[#allocation15_spill]] }
0x11c9   : > { %s3674_s30 = sld [smem:[#allocation11_spill]]  ;;  %s3676_s27 = smov %s3062_s28 }
0x11ca   : > { %s3675_s0 = sld [smem:[#allocation13_spill]]  ;;  %30 = sbr.rel (!%p28_p5) target bundleno = 11 (0xb), region = 190 }
0x11cd   : > { %s3677_s28 = smov %s3672_s29 }
0x11ce   : > { %s3678_s29 = smov %s3673_s18 }
0x11cf   :  { %2462 = vsyncpa [#allocation7], 1 }
0x11d0   :  { %2464 = vsyncpa [#allocation7 + $0x1], 1 }

</bundles_post_ra>
